<compile_context>
chip_gen: v6e
topology: v6e:2x2x1
jax: 0.10.0
libtpu: 0.0.40
codegen_flags: <defaults>
</compile_context>

<pallas_src>
import functools

import jax
import jax.numpy as jnp
from jax.experimental import pallas as pl
from jax.experimental.pallas import tpu as pltpu


BN_EPS = 1e-5                     # torch.nn.BatchNorm3d default
CH_ALIGN = 128                    # lane width: pad channel dims to this
_VMEM_LIMIT_BYTES = 48 * 1024 * 1024   # explicit; fits v7x's 64 MiB with headroom


# ----------------------------- Pallas kernels ------------------------------

def _mm_bn_relu_kernel(x_ref, w_ref, s_ref, b_ref, o_ref):
    # y = relu((x @ w) * scale + bias)         (bf16 inputs, f32 accumulation)
    y = jnp.dot(x_ref[...], w_ref[...], preferred_element_type=jnp.float32)
    y = y * s_ref[...] + b_ref[...]
    o_ref[...] = jnp.maximum(y, 0.0).astype(o_ref.dtype)


def _mm_bn_add_relu_kernel(x_ref, w_ref, s_ref, b_ref, r_ref, o_ref):
    # y = relu((x @ w) * scale + bias + residual)
    y = jnp.dot(x_ref[...], w_ref[...], preferred_element_type=jnp.float32)
    y = y * s_ref[...] + b_ref[...] + r_ref[...].astype(jnp.float32)
    o_ref[...] = jnp.maximum(y, 0.0).astype(o_ref.dtype)


def _conv2_tap_kernel(hp_ref, w_ref, s_ref, b_ref, o_ref, acc_ref, *, S, L):
    """3x3x3 conv for one (batch, out-depth) plane; grid axis 2 = depth tap kd.

    hp_ref : [P,  C ]  padded, spatially flattened input plane at depth d+kd
    w_ref  : [9,  C, Co]  the 9 (kh, kw) taps of this kd weight slice
    o_ref  : [L,  Co]  output rows r0..r0+L-1 of the padded output frame
    acc_ref: [L,  Co]  f32 accumulator, lives across the kd reduction
    """
    kd = pl.program_id(2)

    @pl.when(kd == 0)
    def _init():
        acc_ref[...] = jnp.zeros_like(acc_ref)

    acc = acc_ref[...]
    for kh in range(3):
        for kw in range(3):
            # Row-shift trick: with output rows starting at r0 = S+1, tap
            # (kh, kw) reads the contiguous input window [kh*S+kw, kh*S+kw+L).
            tap = hp_ref[pl.ds(kh * S + kw, L), :]
            acc = acc + jnp.dot(tap, w_ref[kh * 3 + kw],
                                preferred_element_type=jnp.float32)
    acc_ref[...] = acc

    @pl.when(kd == pl.num_programs(2) - 1)
    def _finalize():
        y = acc_ref[...] * s_ref[...] + b_ref[...]
        o_ref[...] = jnp.maximum(y, 0.0).astype(o_ref.dtype)


# ------------------------------ call wrappers -------------------------------

def _choose_tm(M, target=512):
    """Big M tile (HBM roofline) but keep >= 2 grid steps for megacore."""
    tm = min(target, M)
    if M > 16 and M // tm < 2:
        tm = (((M + 1) // 2) + 7) // 8 * 8
    return max(8, min(tm, M))


def _mm_call(x, w, scale, bias, residual=None, *, out_dtype, tm_target=512):
    """Fused (M,K)@(K,N) * scale + bias [+ residual], ReLU.  M tiled."""
    M, K = x.shape
    Nco = w.shape[1]
    tm = _choose_tm(M, tm_target)
    g = -(-M // tm)
    Mp = g * tm
    if Mp != M:
        pad = ((0, Mp - M), (0, 0))
        x = jnp.pad(x, pad)
        if residual is not None:
            residual = jnp.pad(residual, pad)

    in_specs = [
        pl.BlockSpec((tm, K), lambda i: (i, 0)),
        pl.BlockSpec((K, Nco), lambda i: (0, 0)),
        pl.BlockSpec((1, Nco), lambda i: (0, 0)),
        pl.BlockSpec((1, Nco), lambda i: (0, 0)),
    ]
    args = [x, w, scale.reshape(1, -1), bias.reshape(1, -1)]
    if residual is None:
        kernel = _mm_bn_relu_kernel
    else:
        kernel = _mm_bn_add_relu_kernel
        in_specs.append(pl.BlockSpec((tm, Nco), lambda i: (i, 0)))
        args.append(residual)

    out = pl.pallas_call(
        kernel,
        out_shape=jax.ShapeDtypeStruct((Mp, Nco), out_dtype),
        grid=(g,),
        in_specs=in_specs,
        out_specs=pl.BlockSpec((tm, Nco), lambda i: (i, 0)),
        compiler_params=pltpu.CompilerParams(
            dimension_semantics=("parallel",),
            vmem_limit_bytes=_VMEM_LIMIT_BYTES),
    )(*args)
    return out[:M] if Mp != M else out


def conv2_bn_relu(hp, w2, scale, bias, *, H, W, out_dtype):
    """Fused 3x3x3 conv + BN + ReLU on a padded, plane-flattened activation.

    hp : [N, D+2, (H+2)*(W+2), C]  bf16 (zero padded in D/H/W, channels padded)
    w2 : [3, 9, C, Co]             bf16, dims = (kd, kh*3+kw, cin, cout)
    Returns [N, D, L, Co] where L = (H-1)*(W+2)+W rows of the padded out frame.
    """
    Nb, Dp2, P, C = hp.shape
    D = Dp2 - 2
    Co = w2.shape[-1]
    S = W + 2
    L = (H - 1) * S + W
    assert P == (H + 2) * S

    kernel = functools.partial(_conv2_tap_kernel, S=S, L=L)
    return pl.pallas_call(
        kernel,
        out_shape=jax.ShapeDtypeStruct((Nb, D, L, Co), out_dtype),
        grid=(Nb, D, 3),
        in_specs=[
            pl.BlockSpec((None, None, P, C), lambda n, d, kd: (n, d + kd, 0, 0)),
            pl.BlockSpec((None, 9, C, Co), lambda n, d, kd: (kd, 0, 0, 0)),
            pl.BlockSpec((1, Co), lambda n, d, kd: (0, 0)),
            pl.BlockSpec((1, Co), lambda n, d, kd: (0, 0)),
        ],
        out_specs=pl.BlockSpec((None, None, L, Co), lambda n, d, kd: (n, d, 0, 0)),
        scratch_shapes=[pltpu.VMEM((L, Co), jnp.float32)],
        compiler_params=pltpu.CompilerParams(
            dimension_semantics=("parallel", "parallel", "arbitrary"),
            vmem_limit_bytes=_VMEM_LIMIT_BYTES),
    )(hp, w2, scale.reshape(1, -1), bias.reshape(1, -1))


# ------------------------------ Bottleneck ----------------------------------

def _fold_bn(gamma, beta, mean, var, eps=BN_EPS):
    scale = gamma / jnp.sqrt(var + eps)
    bias = beta - mean * scale
    return scale, bias


def _round_up(x, m):
    return ((x + m - 1) // m) * m


def _pad1(v, n):
    return jnp.pad(v, (0, n - v.shape[0]))


def init_params(key, inplanes, planes):
    """Deterministic parameters matching the shapes in Bottleneck.__init__."""
    expansion = 4
    ks = jax.random.split(key, 8)
    p = {}
    p["w1"] = 0.1 * jax.random.normal(ks[0], (inplanes, planes), jnp.float32)
    p["w2"] = 0.1 * jax.random.normal(ks[1], (3, 3, 3, planes, planes), jnp.float32)
    p["w3"] = 0.1 * jax.random.normal(ks[2], (planes, planes * expansion), jnp.float32)
    for i, c in zip((1, 2, 3), (planes, planes, planes * expansion)):
        k0, k1, k2, k3 = jax.random.split(ks[2 + i], 4)
        g = 1.0 + 0.1 * jax.random.normal(k0, (c,), jnp.float32)
        b = 0.1 * jax.random.normal(k1, (c,), jnp.float32)
        m = 0.1 * jax.random.normal(k2, (c,), jnp.float32)
        v = 1.0 + 0.5 * jax.random.uniform(k3, (c,), jnp.float32)
        p[f"bn{i}"] = (g, b, m, v)
    return p


@jax.jit
def bottleneck_forward(x_ncdhw, p):
    """x: [N, C, D, H, W] float32 (PyTorch convention). Returns same layout."""
    N, Cin, D, H, W = x_ncdhw.shape
    planes = p["w1"].shape[1]
    Cout = p["w3"].shape[1]                 # planes * expansion
    assert Cout == Cin                      # stride=1 / downsample=None path
    M = N * D * H * W

    Cp = _round_up(planes, CH_ALIGN)        # padded hidden width (lane dense)
    Cip = _round_up(Cin, CH_ALIGN)          # padded input width
    Cop = _round_up(Cout, CH_ALIGN)         # padded output width (== Cip here)
    cdt = jnp.bfloat16

    # fold BN into per-channel scale/bias (kept f32), pad channels with zeros
    s1, b1 = _fold_bn(*p["bn1"])
    s2, b2 = _fold_bn(*p["bn2"])
    s3, b3 = _fold_bn(*p["bn3"])
    s1, b1 = _pad1(s1, Cp), _pad1(b1, Cp)
    s2, b2 = _pad1(s2, Cp), _pad1(b2, Cp)
    s3, b3 = _pad1(s3, Cop), _pad1(b3, Cop)

    # weights: pad channel dims to the lane width, cast to bf16
    w1 = jnp.pad(p["w1"], ((0, Cip - Cin), (0, Cp - planes))).astype(cdt)     # [Cip, Cp]
    w2 = jnp.pad(p["w2"], ((0, 0),) * 3 + ((0, Cp - planes), (0, Cp - planes)))
    w2 = w2.reshape(3, 9, Cp, Cp).astype(cdt)                                  # [kd, kh*3+kw, ci, co]
    w3 = jnp.pad(p["w3"], ((0, Cp - planes), (0, Cop - Cout))).astype(cdt)     # [Cp, Cop]

    # layout: NCDHW -> NDHWC, pad channels, flatten spatial, cast bf16
    x_ndhwc = jnp.transpose(x_ncdhw, (0, 2, 3, 4, 1))
    x2d = jnp.pad(x_ndhwc, ((0, 0),) * 4 + ((0, Cip - Cin),))
    x2d = x2d.reshape(M, Cip).astype(cdt)

    # conv1 (1x1x1) + bn1 + relu
    out1 = _mm_call(x2d, w1, s1, b1, out_dtype=cdt)                            # [M, Cp] bf16

    # conv2 (3x3x3, pad 1) + bn2 + relu  -- im2col fused inside the kernel
    h1 = out1.reshape(N, D, H, W, Cp)
    hp = jnp.pad(h1, ((0, 0), (1, 1), (1, 1), (1, 1), (0, 0)))                 # zero pad D/H/W
    hp = hp.reshape(N, D + 2, (H + 2) * (W + 2), Cp)                           # flatten each plane
    out2 = conv2_bn_relu(hp, w2, s2, b2, H=H, W=W, out_dtype=cdt)              # [N, D, L, Cp]

    # un-shift: padded-frame row (h+1)*(W+2)+(w+1) - (W+3)  ==  h*(W+2)+w
    S = W + 2
    L = (H - 1) * S + W
    out2 = jnp.pad(out2, ((0, 0), (0, 0), (0, H * S - L), (0, 0)))
    out2 = out2.reshape(N, D, H, S, Cp)[:, :, :, :W, :].reshape(M, Cp)

    # conv3 (1x1x1) + bn3 + residual + relu (downsample=None -> residual = x)
    out3 = _mm_call(out2, w3, s3, b3, residual=x2d, out_dtype=jnp.float32)     # [M, Cop] f32

    y = out3[:, :Cout].reshape(N, D, H, W, Cout)
    return jnp.transpose(y, (0, 4, 1, 2, 3))                                   # back to NCDHW


# --------------------------- pure-JAX reference ------------------------------

def reference_forward(x, p):
    dn = ("NCDHW", "OIDHW", "NCDHW")

    def conv(x, w, pad):
        return jax.lax.conv_general_dilated(
            x, w, window_strides=(1, 1, 1),
            padding=[(pad, pad)] * 3, dimension_numbers=dn)

    def bn(x, params):
        g, b, m, v = params
        sh = (1, -1, 1, 1, 1)
        return ((x - m.reshape(sh)) / jnp.sqrt(v.reshape(sh) + BN_EPS)
                * g.reshape(sh) + b.reshape(sh))

    w1 = jnp.transpose(p["w1"], (1, 0))[:, :, None, None, None]   # O,I,1,1,1
    w2 = jnp.transpose(p["w2"], (4, 3, 0, 1, 2))                  # O,I,3,3,3
    w3 = jnp.transpose(p["w3"], (1, 0))[:, :, None, None, None]

    out = jax.nn.relu(bn(conv(x, w1, 0), p["bn1"]))
    out = jax.nn.relu(bn(conv(out, w2, 1), p["bn2"]))
    out = bn(conv(out, w3, 0), p["bn3"])
    return jax.nn.relu(out + x)


# ---------------------------------- main -------------------------------------

if __name__ == "__main__":
    key = jax.random.PRNGKey(0)
    k_x, k_p = jax.random.split(key)

    # Small shapes consistent with Bottleneck: inplanes = planes * expansion
    N, inplanes, planes = 2, 16, 4
    D, H, W = 4, 8, 8
    x = jax.random.normal(k_x, (N, inplanes, D, H, W), jnp.float32)
    params = init_params(k_p, inplanes, planes)

    # Round x / conv weights to bf16-representable values once, so the Pallas
    # bf16 path and the f32 reference see identical inputs (remaining diffs
    # are bf16 intermediates + accumulation order only).
    def _bf16_round(a):
        return a.astype(jnp.bfloat16).astype(jnp.float32)

    x = _bf16_round(x)
    params = dict(params)
    for k in ("w1", "w2", "w3"):
        params[k] = _bf16_round(params[k])

    y = jax.block_until_ready(bottleneck_forward(x, params))
    y_ref = jax.block_until_ready(reference_forward(x, params))

    assert y.shape == (N, inplanes, D, H, W)
    max_err = float(jnp.max(jnp.abs(y - y_ref)))
    assert jnp.allclose(y, y_ref, rtol=1e-2, atol=1e-2), max_err

    print("KERNEL_OK")
</pallas_src>

<mosaic_0001>
module attributes {stable_mosaic.version = 11 : i64} {
  func.func @_mm_bn_relu_kernel(%arg0: i32, %arg1: memref<256x128xbf16, #tpu.memory_space<vmem>>, %arg2: memref<128x128xbf16, #tpu.memory_space<vmem>>, %arg3: memref<1x128xf32, #tpu.memory_space<vmem>>, %arg4: memref<1x128xf32, #tpu.memory_space<vmem>>, %arg5: memref<256x128xbf16, #tpu.memory_space<vmem>>) attributes {dimension_semantics = [#tpu.dimension_semantics<parallel>], iteration_bounds = array<i64: 2>, scalar_prefetch = 0 : i64, scratch_operands = 0 : i64, tpu.core_type = #tpu.core_type<tc>, window_params = [{transform_indices = @transform_0, window_bounds = array<i64: 256, 128>}, {pipeline_mode = #tpu.pipeline_mode<synchronous>, transform_indices = @transform_1, window_bounds = array<i64: 128, 128>}, {pipeline_mode = #tpu.pipeline_mode<synchronous>, transform_indices = @transform_2, window_bounds = array<i64: 1, 128>}, {pipeline_mode = #tpu.pipeline_mode<synchronous>, transform_indices = @transform_3, window_bounds = array<i64: 1, 128>}, {transform_indices = @transform_4, window_bounds = array<i64: 256, 128>}]} {
    %c0 = arith.constant 0 : index
    %c0_0 = arith.constant 0 : index
    %0 = vector.load %arg1[%c0, %c0_0] : memref<256x128xbf16, #tpu.memory_space<vmem>>, vector<256x128xbf16>
    %c0_1 = arith.constant 0 : index
    %c0_2 = arith.constant 0 : index
    %1 = vector.load %arg2[%c0_1, %c0_2] : memref<128x128xbf16, #tpu.memory_space<vmem>>, vector<128x128xbf16>
    %cst = arith.constant dense<0.000000e+00> : vector<256x128xf32>
    %2 = tpu.matmul %0, %1, %cst {dimension_numbers = #tpu.dot_dimension_numbers<[1], [0], [0], [1], [0, 0, 1, 1], [], []>} : vector<256x128xbf16>, vector<128x128xbf16>, vector<256x128xf32> -> vector<256x128xf32>
    %c0_3 = arith.constant 0 : index
    %c0_4 = arith.constant 0 : index
    %3 = vector.load %arg3[%c0_3, %c0_4] : memref<1x128xf32, #tpu.memory_space<vmem>>, vector<1x128xf32>
    %4 = vector.broadcast %3 : vector<1x128xf32> to vector<256x128xf32>
    %5 = arith.mulf %2, %4 : vector<256x128xf32>
    %c0_5 = arith.constant 0 : index
    %c0_6 = arith.constant 0 : index
    %6 = vector.load %arg4[%c0_5, %c0_6] : memref<1x128xf32, #tpu.memory_space<vmem>>, vector<1x128xf32>
    %7 = vector.broadcast %6 : vector<1x128xf32> to vector<256x128xf32>
    %8 = arith.addf %5, %7 : vector<256x128xf32>
    %cst_7 = arith.constant 0.000000e+00 : f32
    %9 = vector.broadcast %cst_7 : f32 to vector<256x128xf32>
    %10 = arith.maximumf %8, %9 : vector<256x128xf32>
    %11 = arith.truncf %10 : vector<256x128xf32> to vector<256x128xbf16>
    %c0_8 = arith.constant 0 : index
    %c0_9 = arith.constant 0 : index
    %12 = vector.load %arg5[%c0_8, %c0_9] : memref<256x128xbf16, #tpu.memory_space<vmem>>, vector<256x128xbf16>
    tpu.vector_store %arg5[%c0_8, %c0_9], %11 {strides = array<i32>} : memref<256x128xbf16, #tpu.memory_space<vmem>>, vector<256x128xbf16>,
    return
  }
  func.func @transform_0(%arg0: i32) -> (i32, i32) {
    %c0_i32 = arith.constant 0 : i32
    %c0_i32_0 = arith.constant 0 : i32
    return %arg0, %c0_i32 : i32, i32
  }
  func.func @transform_1(%arg0: i32) -> (i32, i32) {
    %c0_i32 = arith.constant 0 : i32
    %c0_i32_0 = arith.constant 0 : i32
    %c0_i32_1 = arith.constant 0 : i32
    return %c0_i32, %c0_i32_0 : i32, i32
  }
  func.func @transform_2(%arg0: i32) -> (i32, i32) {
    %c0_i32 = arith.constant 0 : i32
    %c0_i32_0 = arith.constant 0 : i32
    %c0_i32_1 = arith.constant 0 : i32
    return %c0_i32, %c0_i32_0 : i32, i32
  }
  func.func @transform_3(%arg0: i32) -> (i32, i32) {
    %c0_i32 = arith.constant 0 : i32
    %c0_i32_0 = arith.constant 0 : i32
    %c0_i32_1 = arith.constant 0 : i32
    return %c0_i32, %c0_i32_0 : i32, i32
  }
  func.func @transform_4(%arg0: i32) -> (i32, i32) {
    %c0_i32 = arith.constant 0 : i32
    %c0_i32_0 = arith.constant 0 : i32
    return %arg0, %c0_i32 : i32, i32
  }
}

module attributes {stable_mosaic.version = 11 : i64} {
  func.func @_conv2_tap_kernel(%arg0: i32, %arg1: i32, %arg2: i32, %arg3: memref<1x1x100x128xbf16, #tpu.memory_space<vmem>>, %arg4: memref<1x9x128x128xbf16, #tpu.memory_space<vmem>>, %arg5: memref<1x128xf32, #tpu.memory_space<vmem>>, %arg6: memref<1x128xf32, #tpu.memory_space<vmem>>, %arg7: memref<1x1x78x128xbf16, #tpu.memory_space<vmem>>, %arg8: memref<78x128xf32, #tpu.memory_space<vmem>>) attributes {dimension_semantics = [#tpu.dimension_semantics<parallel>, #tpu.dimension_semantics<parallel>, #tpu.dimension_semantics<arbitrary>], iteration_bounds = array<i64: 2, 4, 3>, scalar_prefetch = 0 : i64, scratch_operands = 1 : i64, tpu.core_type = #tpu.core_type<tc>, window_params = [{transform_indices = @transform_0, window_bounds = array<i64: 1, 1, 100, 128>}, {transform_indices = @transform_1, window_bounds = array<i64: 1, 9, 128, 128>}, {pipeline_mode = #tpu.pipeline_mode<synchronous>, transform_indices = @transform_2, window_bounds = array<i64: 1, 128>}, {pipeline_mode = #tpu.pipeline_mode<synchronous>, transform_indices = @transform_3, window_bounds = array<i64: 1, 128>}, {transform_indices = @transform_4, window_bounds = array<i64: 1, 1, 78, 128>}]} {
    %c0_i32 = arith.constant 0 : i32
    %0 = arith.cmpi eq, %arg2, %c0_i32 : i32
    %1 = arith.extui %0 : i1 to i32
    %c0_i32_0 = arith.constant 0 : i32
    %2 = arith.cmpi ne, %1, %c0_i32_0 : i32
    scf.if %2 {
      %cst_71 = arith.constant 0.000000e+00 : f32
      %62 = vector.broadcast %cst_71 : f32 to vector<78x128xf32>
      %c0_72 = arith.constant 0 : index
      %c0_73 = arith.constant 0 : index
      %63 = vector.load %arg8[%c0_72, %c0_73] : memref<78x128xf32, #tpu.memory_space<vmem>>, vector<78x128xf32>
      tpu.vector_store %arg8[%c0_72, %c0_73], %62 {strides = array<i32>} : memref<78x128xf32, #tpu.memory_space<vmem>>, vector<78x128xf32>,
    } else {
    }
    %c0 = arith.constant 0 : index
    %c0_1 = arith.constant 0 : index
    %3 = vector.load %arg8[%c0, %c0_1] : memref<78x128xf32, #tpu.memory_space<vmem>>, vector<78x128xf32>
    %c0_2 = arith.constant 0 : index
    %c0_3 = arith.constant 0 : index
    %c0_4 = arith.constant 0 : index
    %c0_5 = arith.constant 0 : index
    %4 = vector.load %arg3[%c0_2, %c0_3, %c0_4, %c0_5] : memref<1x1x100x128xbf16, #tpu.memory_space<vmem>>, vector<1x1x78x128xbf16>
    %5 = vector.shape_cast %4 : vector<1x1x78x128xbf16> to vector<78x128xbf16>
    %c0_6 = arith.constant 0 : index
    %c0_7 = arith.constant 0 : index
    %c0_8 = arith.constant 0 : index
    %c0_9 = arith.constant 0 : index
    %6 = vector.load %arg4[%c0_6, %c0_7, %c0_8, %c0_9] : memref<1x9x128x128xbf16, #tpu.memory_space<vmem>>, vector<1x1x128x128xbf16>
    %7 = vector.shape_cast %6 : vector<1x1x128x128xbf16> to vector<128x128xbf16>
    %cst = arith.constant dense<0.000000e+00> : vector<78x128xf32>
    %8 = tpu.matmul %5, %7, %cst {dimension_numbers = #tpu.dot_dimension_numbers<[1], [0], [0], [1], [0, 0, 1, 1], [], []>} : vector<78x128xbf16>, vector<128x128xbf16>, vector<78x128xf32> -> vector<78x128xf32>
    %9 = arith.addf %3, %8 : vector<78x128xf32>
    %c0_10 = arith.constant 0 : index
    %c0_11 = arith.constant 0 : index
    %c1 = arith.constant 1 : index
    %c0_12 = arith.constant 0 : index
    %10 = vector.load %arg3[%c0_10, %c0_11, %c1, %c0_12] : memref<1x1x100x128xbf16, #tpu.memory_space<vmem>>, vector<1x1x78x128xbf16>
    %11 = vector.shape_cast %10 : vector<1x1x78x128xbf16> to vector<78x128xbf16>
    %c0_13 = arith.constant 0 : index
    %c1_14 = arith.constant 1 : index
    %c0_15 = arith.constant 0 : index
    %c0_16 = arith.constant 0 : index
    %12 = vector.load %arg4[%c0_13, %c1_14, %c0_15, %c0_16] : memref<1x9x128x128xbf16, #tpu.memory_space<vmem>>, vector<1x1x128x128xbf16>
    %13 = vector.shape_cast %12 : vector<1x1x128x128xbf16> to vector<128x128xbf16>
    %cst_17 = arith.constant dense<0.000000e+00> : vector<78x128xf32>
    %14 = tpu.matmul %11, %13, %cst_17 {dimension_numbers = #tpu.dot_dimension_numbers<[1], [0], [0], [1], [0, 0, 1, 1], [], []>} : vector<78x128xbf16>, vector<128x128xbf16>, vector<78x128xf32> -> vector<78x128xf32>
    %15 = arith.addf %9, %14 : vector<78x128xf32>
    %c0_18 = arith.constant 0 : index
    %c0_19 = arith.constant 0 : index
    %c2 = arith.constant 2 : index
    %c0_20 = arith.constant 0 : index
    %16 = vector.load %arg3[%c0_18, %c0_19, %c2, %c0_20] : memref<1x1x100x128xbf16, #tpu.memory_space<vmem>>, vector<1x1x78x128xbf16>
    %17 = vector.shape_cast %16 : vector<1x1x78x128xbf16> to vector<78x128xbf16>
    %c0_21 = arith.constant 0 : index
    %c2_22 = arith.constant 2 : index
    %c0_23 = arith.constant 0 : index
    %c0_24 = arith.constant 0 : index
    %18 = vector.load %arg4[%c0_21, %c2_22, %c0_23, %c0_24] : memref<1x9x128x128xbf16, #tpu.memory_space<vmem>>, vector<1x1x128x128xbf16>
    %19 = vector.shape_cast %18 : vector<1x1x128x128xbf16> to vector<128x128xbf16>
    %cst_25 = arith.constant dense<0.000000e+00> : vector<78x128xf32>
    %20 = tpu.matmul %17, %19, %cst_25 {dimension_numbers = #tpu.dot_dimension_numbers<[1], [0], [0], [1], [0, 0, 1, 1], [], []>} : vector<78x128xbf16>, vector<128x128xbf16>, vector<78x128xf32> -> vector<78x128xf32>
    %21 = arith.addf %15, %20 : vector<78x128xf32>
    %c0_26 = arith.constant 0 : index
    %c0_27 = arith.constant 0 : index
    %c10 = arith.constant 10 : index
    %c0_28 = arith.constant 0 : index
    %22 = vector.load %arg3[%c0_26, %c0_27, %c10, %c0_28] : memref<1x1x100x128xbf16, #tpu.memory_space<vmem>>, vector<1x1x78x128xbf16>
    %23 = vector.shape_cast %22 : vector<1x1x78x128xbf16> to vector<78x128xbf16>
    %c0_29 = arith.constant 0 : index
    %c3 = arith.constant 3 : index
    %c0_30 = arith.constant 0 : index
    %c0_31 = arith.constant 0 : index
    %24 = vector.load %arg4[%c0_29, %c3, %c0_30, %c0_31] : memref<1x9x128x128xbf16, #tpu.memory_space<vmem>>, vector<1x1x128x128xbf16>
    %25 = vector.shape_cast %24 : vector<1x1x128x128xbf16> to vector<128x128xbf16>
    %cst_32 = arith.constant dense<0.000000e+00> : vector<78x128xf32>
    %26 = tpu.matmul %23, %25, %cst_32 {dimension_numbers = #tpu.dot_dimension_numbers<[1], [0], [0], [1], [0, 0, 1, 1], [], []>} : vector<78x128xbf16>, vector<128x128xbf16>, vector<78x128xf32> -> vector<78x128xf32>
    %27 = arith.addf %21, %26 : vector<78x128xf32>
    %c0_33 = arith.constant 0 : index
    %c0_34 = arith.constant 0 : index
    %c11 = arith.constant 11 : index
    %c0_35 = arith.constant 0 : index
    %28 = vector.load %arg3[%c0_33, %c0_34, %c11, %c0_35] : memref<1x1x100x128xbf16, #tpu.memory_space<vmem>>, vector<1x1x78x128xbf16>
    %29 = vector.shape_cast %28 : vector<1x1x78x128xbf16> to vector<78x128xbf16>
    %c0_36 = arith.constant 0 : index
    %c4 = arith.constant 4 : index
    %c0_37 = arith.constant 0 : index
    %c0_38 = arith.constant 0 : index
    %30 = vector.load %arg4[%c0_36, %c4, %c0_37, %c0_38] : memref<1x9x128x128xbf16, #tpu.memory_space<vmem>>, vector<1x1x128x128xbf16>
    %31 = vector.shape_cast %30 : vector<1x1x128x128xbf16> to vector<128x128xbf16>
    %cst_39 = arith.constant dense<0.000000e+00> : vector<78x128xf32>
    %32 = tpu.matmul %29, %31, %cst_39 {dimension_numbers = #tpu.dot_dimension_numbers<[1], [0], [0], [1], [0, 0, 1, 1], [], []>} : vector<78x128xbf16>, vector<128x128xbf16>, vector<78x128xf32> -> vector<78x128xf32>
    %33 = arith.addf %27, %32 : vector<78x128xf32>
    %c0_40 = arith.constant 0 : index
    %c0_41 = arith.constant 0 : index
    %c12 = arith.constant 12 : index
    %c0_42 = arith.constant 0 : index
    %34 = vector.load %arg3[%c0_40, %c0_41, %c12, %c0_42] : memref<1x1x100x128xbf16, #tpu.memory_space<vmem>>, vector<1x1x78x128xbf16>
    %35 = vector.shape_cast %34 : vector<1x1x78x128xbf16> to vector<78x128xbf16>
    %c0_43 = arith.constant 0 : index
    %c5 = arith.constant 5 : index
    %c0_44 = arith.constant 0 : index
    %c0_45 = arith.constant 0 : index
    %36 = vector.load %arg4[%c0_43, %c5, %c0_44, %c0_45] : memref<1x9x128x128xbf16, #tpu.memory_space<vmem>>, vector<1x1x128x128xbf16>
    %37 = vector.shape_cast %36 : vector<1x1x128x128xbf16> to vector<128x128xbf16>
    %cst_46 = arith.constant dense<0.000000e+00> : vector<78x128xf32>
    %38 = tpu.matmul %35, %37, %cst_46 {dimension_numbers = #tpu.dot_dimension_numbers<[1], [0], [0], [1], [0, 0, 1, 1], [], []>} : vector<78x128xbf16>, vector<128x128xbf16>, vector<78x128xf32> -> vector<78x128xf32>
    %39 = arith.addf %33, %38 : vector<78x128xf32>
    %c0_47 = arith.constant 0 : index
    %c0_48 = arith.constant 0 : index
    %c20 = arith.constant 20 : index
    %c0_49 = arith.constant 0 : index
    %40 = vector.load %arg3[%c0_47, %c0_48, %c20, %c0_49] : memref<1x1x100x128xbf16, #tpu.memory_space<vmem>>, vector<1x1x78x128xbf16>
    %41 = vector.shape_cast %40 : vector<1x1x78x128xbf16> to vector<78x128xbf16>
    %c0_50 = arith.constant 0 : index
    %c6 = arith.constant 6 : index
    %c0_51 = arith.constant 0 : index
    %c0_52 = arith.constant 0 : index
    %42 = vector.load %arg4[%c0_50, %c6, %c0_51, %c0_52] : memref<1x9x128x128xbf16, #tpu.memory_space<vmem>>, vector<1x1x128x128xbf16>
    %43 = vector.shape_cast %42 : vector<1x1x128x128xbf16> to vector<128x128xbf16>
    %cst_53 = arith.constant dense<0.000000e+00> : vector<78x128xf32>
    %44 = tpu.matmul %41, %43, %cst_53 {dimension_numbers = #tpu.dot_dimension_numbers<[1], [0], [0], [1], [0, 0, 1, 1], [], []>} : vector<78x128xbf16>, vector<128x128xbf16>, vector<78x128xf32> -> vector<78x128xf32>
    %45 = arith.addf %39, %44 : vector<78x128xf32>
    %c0_54 = arith.constant 0 : index
    %c0_55 = arith.constant 0 : index
    %c21 = arith.constant 21 : index
    %c0_56 = arith.constant 0 : index
    %46 = vector.load %arg3[%c0_54, %c0_55, %c21, %c0_56] : memref<1x1x100x128xbf16, #tpu.memory_space<vmem>>, vector<1x1x78x128xbf16>
    %47 = vector.shape_cast %46 : vector<1x1x78x128xbf16> to vector<78x128xbf16>
    %c0_57 = arith.constant 0 : index
    %c7 = arith.constant 7 : index
    %c0_58 = arith.constant 0 : index
    %c0_59 = arith.constant 0 : index
    %48 = vector.load %arg4[%c0_57, %c7, %c0_58, %c0_59] : memref<1x9x128x128xbf16, #tpu.memory_space<vmem>>, vector<1x1x128x128xbf16>
    %49 = vector.shape_cast %48 : vector<1x1x128x128xbf16> to vector<128x128xbf16>
    %cst_60 = arith.constant dense<0.000000e+00> : vector<78x128xf32>
    %50 = tpu.matmul %47, %49, %cst_60 {dimension_numbers = #tpu.dot_dimension_numbers<[1], [0], [0], [1], [0, 0, 1, 1], [], []>} : vector<78x128xbf16>, vector<128x128xbf16>, vector<78x128xf32> -> vector<78x128xf32>
    %51 = arith.addf %45, %50 : vector<78x128xf32>
    %c0_61 = arith.constant 0 : index
    %c0_62 = arith.constant 0 : index
    %c22 = arith.constant 22 : index
    %c0_63 = arith.constant 0 : index
    %52 = vector.load %arg3[%c0_61, %c0_62, %c22, %c0_63] : memref<1x1x100x128xbf16, #tpu.memory_space<vmem>>, vector<1x1x78x128xbf16>
    %53 = vector.shape_cast %52 : vector<1x1x78x128xbf16> to vector<78x128xbf16>
    %c0_64 = arith.constant 0 : index
    %c8 = arith.constant 8 : index
    %c0_65 = arith.constant 0 : index
    %c0_66 = arith.constant 0 : index
    %54 = vector.load %arg4[%c0_64, %c8, %c0_65, %c0_66] : memref<1x9x128x128xbf16, #tpu.memory_space<vmem>>, vector<1x1x128x128xbf16>
    %55 = vector.shape_cast %54 : vector<1x1x128x128xbf16> to vector<128x128xbf16>
    %cst_67 = arith.constant dense<0.000000e+00> : vector<78x128xf32>
    %56 = tpu.matmul %53, %55, %cst_67 {dimension_numbers = #tpu.dot_dimension_numbers<[1], [0], [0], [1], [0, 0, 1, 1], [], []>} : vector<78x128xbf16>, vector<128x128xbf16>, vector<78x128xf32> -> vector<78x128xf32>
    %57 = arith.addf %51, %56 : vector<78x128xf32>
    %c0_68 = arith.constant 0 : index
    %c0_69 = arith.constant 0 : index
    %58 = vector.load %arg8[%c0_68, %c0_69] : memref<78x128xf32, #tpu.memory_space<vmem>>, vector<78x128xf32>
    tpu.vector_store %arg8[%c0_68, %c0_69], %57 {strides = array<i32>} : memref<78x128xf32, #tpu.memory_space<vmem>>, vector<78x128xf32>,
    %c2_i32 = arith.constant 2 : i32
    %59 = arith.cmpi eq, %arg2, %c2_i32 : i32
    %60 = arith.extui %59 : i1 to i32
    %c0_i32_70 = arith.constant 0 : i32
    %61 = arith.cmpi ne, %60, %c0_i32_70 : i32
    scf.if %61 {
      %c0_71 = arith.constant 0 : index
      %c0_72 = arith.constant 0 : index
      %62 = vector.load %arg8[%c0_71, %c0_72] : memref<78x128xf32, #tpu.memory_space<vmem>>, vector<78x128xf32>
      %c0_73 = arith.constant 0 : index
      %c0_74 = arith.constant 0 : index
      %63 = vector.load %arg5[%c0_73, %c0_74] : memref<1x128xf32, #tpu.memory_space<vmem>>, vector<1x128xf32>
      %64 = vector.broadcast %63 : vector<1x128xf32> to vector<78x128xf32>
      %65 = arith.mulf %62, %64 : vector<78x128xf32>
      %c0_75 = arith.constant 0 : index
      %c0_76 = arith.constant 0 : index
      %66 = vector.load %arg6[%c0_75, %c0_76] : memref<1x128xf32, #tpu.memory_space<vmem>>, vector<1x128xf32>
      %67 = vector.broadcast %66 : vector<1x128xf32> to vector<78x128xf32>
      %68 = arith.addf %65, %67 : vector<78x128xf32>
      %cst_77 = arith.constant 0.000000e+00 : f32
      %69 = vector.broadcast %cst_77 : f32 to vector<78x128xf32>
      %70 = arith.maximumf %68, %69 : vector<78x128xf32>
      %71 = arith.truncf %70 : vector<78x128xf32> to vector<78x128xbf16>
      %c0_78 = arith.constant 0 : index
      %c0_79 = arith.constant 0 : index
      %c0_80 = arith.constant 0 : index
      %c0_81 = arith.constant 0 : index
      %72 = vector.load %arg7[%c0_78, %c0_79, %c0_80, %c0_81] : memref<1x1x78x128xbf16, #tpu.memory_space<vmem>>, vector<1x1x78x128xbf16>
      %73 = vector.shape_cast %72 : vector<1x1x78x128xbf16> to vector<78x128xbf16>
      %74 = vector.shape_cast %71 : vector<78x128xbf16> to vector<1x1x78x128xbf16>
      tpu.vector_store %arg7[%c0_78, %c0_79, %c0_80, %c0_81], %74 {strides = array<i32>} : memref<1x1x78x128xbf16, #tpu.memory_space<vmem>>, vector<1x1x78x128xbf16>,
    } else {
    }
    return
  }
  func.func @transform_0(%arg0: i32, %arg1: i32, %arg2: i32) -> (i32, i32, i32, i32) {
    %0 = arith.addi %arg1, %arg2 : i32
    %c0_i32 = arith.constant 0 : i32
    %c0_i32_0 = arith.constant 0 : i32
    %c0_i32_1 = arith.constant 0 : i32
    return %arg0, %0, %c0_i32, %c0_i32_0 : i32, i32, i32, i32
  }
  func.func @transform_1(%arg0: i32, %arg1: i32, %arg2: i32) -> (i32, i32, i32, i32) {
    %c0_i32 = arith.constant 0 : i32
    %c0_i32_0 = arith.constant 0 : i32
    %c0_i32_1 = arith.constant 0 : i32
    %c0_i32_2 = arith.constant 0 : i32
    return %arg2, %c0_i32, %c0_i32_0, %c0_i32_1 : i32, i32, i32, i32
  }
  func.func @transform_2(%arg0: i32, %arg1: i32, %arg2: i32) -> (i32, i32) {
    %c0_i32 = arith.constant 0 : i32
    %c0_i32_0 = arith.constant 0 : i32
    %c0_i32_1 = arith.constant 0 : i32
    return %c0_i32, %c0_i32_0 : i32, i32
  }
  func.func @transform_3(%arg0: i32, %arg1: i32, %arg2: i32) -> (i32, i32) {
    %c0_i32 = arith.constant 0 : i32
    %c0_i32_0 = arith.constant 0 : i32
    %c0_i32_1 = arith.constant 0 : i32
    return %c0_i32, %c0_i32_0 : i32, i32
  }
  func.func @transform_4(%arg0: i32, %arg1: i32, %arg2: i32) -> (i32, i32, i32, i32) {
    %c0_i32 = arith.constant 0 : i32
    %c0_i32_0 = arith.constant 0 : i32
    %c0_i32_1 = arith.constant 0 : i32
    return %arg0, %arg1, %c0_i32, %c0_i32_0 : i32, i32, i32, i32
  }
}

module attributes {stable_mosaic.version = 11 : i64} {
  func.func @_mm_bn_add_relu_kernel(%arg0: i32, %arg1: memref<256x128xbf16, #tpu.memory_space<vmem>>, %arg2: memref<128x128xbf16, #tpu.memory_space<vmem>>, %arg3: memref<1x128xf32, #tpu.memory_space<vmem>>, %arg4: memref<1x128xf32, #tpu.memory_space<vmem>>, %arg5: memref<256x128xbf16, #tpu.memory_space<vmem>>, %arg6: memref<256x128xf32, #tpu.memory_space<vmem>>) attributes {dimension_semantics = [#tpu.dimension_semantics<parallel>], iteration_bounds = array<i64: 2>, scalar_prefetch = 0 : i64, scratch_operands = 0 : i64, tpu.core_type = #tpu.core_type<tc>, window_params = [{transform_indices = @transform_0, window_bounds = array<i64: 256, 128>}, {pipeline_mode = #tpu.pipeline_mode<synchronous>, transform_indices = @transform_1, window_bounds = array<i64: 128, 128>}, {pipeline_mode = #tpu.pipeline_mode<synchronous>, transform_indices = @transform_2, window_bounds = array<i64: 1, 128>}, {pipeline_mode = #tpu.pipeline_mode<synchronous>, transform_indices = @transform_3, window_bounds = array<i64: 1, 128>}, {transform_indices = @transform_4, window_bounds = array<i64: 256, 128>}, {transform_indices = @transform_5, window_bounds = array<i64: 256, 128>}]} {
    %c0 = arith.constant 0 : index
    %c0_0 = arith.constant 0 : index
    %0 = vector.load %arg1[%c0, %c0_0] : memref<256x128xbf16, #tpu.memory_space<vmem>>, vector<256x128xbf16>
    %c0_1 = arith.constant 0 : index
    %c0_2 = arith.constant 0 : index
    %1 = vector.load %arg2[%c0_1, %c0_2] : memref<128x128xbf16, #tpu.memory_space<vmem>>, vector<128x128xbf16>
    %cst = arith.constant dense<0.000000e+00> : vector<256x128xf32>
    %2 = tpu.matmul %0, %1, %cst {dimension_numbers = #tpu.dot_dimension_numbers<[1], [0], [0], [1], [0, 0, 1, 1], [], []>} : vector<256x128xbf16>, vector<128x128xbf16>, vector<256x128xf32> -> vector<256x128xf32>
    %c0_3 = arith.constant 0 : index
    %c0_4 = arith.constant 0 : index
    %3 = vector.load %arg3[%c0_3, %c0_4] : memref<1x128xf32, #tpu.memory_space<vmem>>, vector<1x128xf32>
    %4 = vector.broadcast %3 : vector<1x128xf32> to vector<256x128xf32>
    %5 = arith.mulf %2, %4 : vector<256x128xf32>
    %c0_5 = arith.constant 0 : index
    %c0_6 = arith.constant 0 : index
    %6 = vector.load %arg4[%c0_5, %c0_6] : memref<1x128xf32, #tpu.memory_space<vmem>>, vector<1x128xf32>
    %7 = vector.broadcast %6 : vector<1x128xf32> to vector<256x128xf32>
    %8 = arith.addf %5, %7 : vector<256x128xf32>
    %c0_7 = arith.constant 0 : index
    %c0_8 = arith.constant 0 : index
    %9 = vector.load %arg5[%c0_7, %c0_8] : memref<256x128xbf16, #tpu.memory_space<vmem>>, vector<256x128xbf16>
    %10 = arith.extf %9 : vector<256x128xbf16> to vector<256x128xf32>
    %11 = arith.addf %8, %10 : vector<256x128xf32>
    %cst_9 = arith.constant 0.000000e+00 : f32
    %12 = vector.broadcast %cst_9 : f32 to vector<256x128xf32>
    %13 = arith.maximumf %11, %12 : vector<256x128xf32>
    %c0_10 = arith.constant 0 : index
    %c0_11 = arith.constant 0 : index
    %14 = vector.load %arg6[%c0_10, %c0_11] : memref<256x128xf32, #tpu.memory_space<vmem>>, vector<256x128xf32>
    tpu.vector_store %arg6[%c0_10, %c0_11], %13 {strides = array<i32>} : memref<256x128xf32, #tpu.memory_space<vmem>>, vector<256x128xf32>,
    return
  }
  func.func @transform_0(%arg0: i32) -> (i32, i32) {
    %c0_i32 = arith.constant 0 : i32
    %c0_i32_0 = arith.constant 0 : i32
    return %arg0, %c0_i32 : i32, i32
  }
  func.func @transform_1(%arg0: i32) -> (i32, i32) {
    %c0_i32 = arith.constant 0 : i32
    %c0_i32_0 = arith.constant 0 : i32
    %c0_i32_1 = arith.constant 0 : i32
    return %c0_i32, %c0_i32_0 : i32, i32
  }
  func.func @transform_2(%arg0: i32) -> (i32, i32) {
    %c0_i32 = arith.constant 0 : i32
    %c0_i32_0 = arith.constant 0 : i32
    %c0_i32_1 = arith.constant 0 : i32
    return %c0_i32, %c0_i32_0 : i32, i32
  }
  func.func @transform_3(%arg0: i32) -> (i32, i32) {
    %c0_i32 = arith.constant 0 : i32
    %c0_i32_0 = arith.constant 0 : i32
    %c0_i32_1 = arith.constant 0 : i32
    return %c0_i32, %c0_i32_0 : i32, i32
  }
  func.func @transform_4(%arg0: i32) -> (i32, i32) {
    %c0_i32 = arith.constant 0 : i32
    %c0_i32_0 = arith.constant 0 : i32
    return %arg0, %c0_i32 : i32, i32
  }
  func.func @transform_5(%arg0: i32) -> (i32, i32) {
    %c0_i32 = arith.constant 0 : i32
    %c0_i32_0 = arith.constant 0 : i32
    return %arg0, %c0_i32 : i32, i32
  }
}

</mosaic_0001>

<bundles_post_ra>
// kernel: bottleneck_forward.3
= control target key start
LH: loop header
LB: loop body
LE: loop exit
PB: predicated region body
PF: predicated region fallthrough
CT: control target
= control target key end

     0   :  { %s1230_s15 = smov 0   ;;  %s1388_s0 = inlined_call_operand.vmem [shape: bf16[512,128], index: 0, kind: input, shape index: {}]   ;;  %s1389_s1 = inlined_call_operand.vmem [shape: bf16[128,128], index: 1, kind: input, shape index: {}]   ;;  %s1390_s2 = inlined_call_operand.vmem [shape: f32[1,128], index: 2, kind: input, shape index: {}]   ;;  %s1391_s3 = inlined_call_operand.vmem [shape: f32[1,128], index: 3, kind: input, shape index: {}]   ;;  %s1392_s4 = inlined_call_operand.vmem [shape: bf16[512,128], index: 4, kind: output, shape index: {}]  }
   0x1 LB: > { %s881_s16 = sadd.s32 4294967295, %s1203_s15   ;;  %p885_p0 = scmp.ge.s32.totalorder %s1203_s15, 1  ;;  %s1203_s15 = sphi %s1230_s15, %s14_s15  }
   0x2   : > { %p163_p1 = scmp.lt.s32.totalorder %s1203_s15, 3 }
   0x4   : > { %p164_p2 = pnand %p885_p0, %p163_p1 }
   0x5   : > { %s886_s19 = sshll.u32 (!%p164_p2), %s881_s16, 5 }
   0x6   : > { %167 = sbr.rel (%p164_p2) target bundleno = 276 (0x114), region = 36  ;;  %p190_p3 = scmp.lt.s32.totalorder (!%p164_p2), %s886_s19, 63 }
   0xb   : > { %v1173_v0 = vld [vmem:[%s1389_s1 + $0x38] sm:$0xff]   ;;  %v1174_v1 = vld [vmem:[%s1389_s1 + $0x30] sm:$0xff]   ;;  %s1394_s19 = smov (!%p190_p3, %s886_s19), 63  ;;  %v1175_v2 = vld [vmem:[%s1389_s1 + $0x28] sm:$0xff]  }
   0xc   : > { %1101 = vmatprep.subr.bf16.mxu0 %v1173_v0  ;;  %1149 = vmatprep.subr.bf16.mxu1 %v1173_v0  ;;  %s887_s24 = sshll.u32 %s1394_s19, 2  ;;  %v1176_v3 = vld [vmem:[%s1389_s1 + $0x20] sm:$0xff]   ;;  %v1177_v6 = vld [vmem:[%s1389_s1 + $0x18] sm:$0xff]   ;;  %v1178_v7 = vld [vmem:[%s1389_s1 + $0x10] sm:$0xff]  }
   0xd   : > { %1102 = vmatpush3.bf16.msra.mxu0 %v1173_v0  ;;  %1157 = vmatpush3.bf16.msra.mxu1 %v1173_v0  ;;  %s1255_s27 = scalar_lea.vmem %s1388_s0, %s887_s24  ;;  %v1179_v8 = vld [vmem:[%s1389_s1 + $0x8] sm:$0xff]   ;;  %v1180_v9 = vld [vmem:[%s1389_s1] sm:$0xff]   ;;  %s1321_s20 = scalar_lea.vmem %s1392_s4, %s887_s24 }
   0xe   : > { %1103 = vmatprep.subr.bf16.mxu0 %v1174_v1  ;;  %1150 = vmatprep.subr.bf16.mxu1 %v1174_v1  ;;  %v1181_v4 = vld [vmem:[%s1255_s27] sm:$0xff]   ;;  %v1183_v10 = vld [vmem:[%s1255_s27 + $0x8] sm:$0xff]   ;;  %v1185_v12 = vld [vmem:[%s1255_s27 + $0x10] sm:$0xff]  }
   0xf   : > { %v1182_v5 = vld [vmem:[%s1255_s27 + $0x40] sm:$0xff]   ;;  %1117 = vmatprep.mubr.bf16.mxu0 %v1181_v4  ;;  %v1184_v11 = vld [vmem:[%s1255_s27 + $0x48] sm:$0xff]   ;;  %v1186_v13 = vld [vmem:[%s1255_s27 + $0x50] sm:$0xff]  }
  0x10   : > { %1133 = vmatprep.mubr.bf16.mxu1 %v1182_v5  ;;  %v1187_v14 = vld [vmem:[%s1255_s27 + $0x18] sm:$0xff]   ;;  %v1189_v16 = vld [vmem:[%s1255_s27 + $0x20] sm:$0xff]   ;;  %v1191_v18 = vld [vmem:[%s1255_s27 + $0x28] sm:$0xff]  }
  0x11   : > { %1104 = vmatpush3.bf16.msra.mxu0 %v1174_v1  ;;  %1158 = vmatpush3.bf16.msra.mxu1 %v1174_v1  ;;  %v1188_v15 = vld [vmem:[%s1255_s27 + $0x58] sm:$0xff]   ;;  %v1190_v17 = vld [vmem:[%s1255_s27 + $0x60] sm:$0xff]   ;;  %v1192_v19 = vld [vmem:[%s1255_s27 + $0x68] sm:$0xff]  }
  0x12   : > { %1105 = vmatprep.subr.bf16.mxu0 %v1175_v2  ;;  %1151 = vmatprep.subr.bf16.mxu1 %v1175_v2  ;;  %v1193_v20 = vld [vmem:[%s1255_s27 + $0x30] sm:$0xff]   ;;  %v1195_v22 = vld [vmem:[%s1255_s27 + $0x38] sm:$0xff]   ;;  %v1291_v24 = vld [vmem:[%s1390_s2] ss:$0 sm:$0xff] }
  0x13   : > { %v1194_v21 = vld [vmem:[%s1255_s27 + $0x70] sm:$0xff]   ;;  %v1196_v23 = vld [vmem:[%s1255_s27 + $0x78] sm:$0xff]   ;;  %v1298_v29 = vld [vmem:[%s1391_s3] ss:$0 sm:$0xff] }
  0x15   : > { %1106 = vmatpush3.bf16.msra.mxu0 %v1175_v2  ;;  %1159 = vmatpush3.bf16.msra.mxu1 %v1175_v2 }
  0x16   : > { %1107 = vmatprep.subr.bf16.mxu0 %v1176_v3  ;;  %1152 = vmatprep.subr.bf16.mxu1 %v1176_v3 }
  0x19   : > { %1108 = vmatpush3.bf16.msra.mxu0 %v1176_v3  ;;  %1160 = vmatpush3.bf16.msra.mxu1 %v1176_v3 }
  0x1a   : > { %1109 = vmatprep.subr.bf16.mxu0 %v1177_v6  ;;  %1153 = vmatprep.subr.bf16.mxu1 %v1177_v6 }
  0x1d   : > { %1110 = vmatpush3.bf16.msra.mxu0 %v1177_v6  ;;  %1161 = vmatpush3.bf16.msra.mxu1 %v1177_v6 }
  0x1e   : > { %1111 = vmatprep.subr.bf16.mxu0 %v1178_v7  ;;  %1154 = vmatprep.subr.bf16.mxu1 %v1178_v7 }
  0x21   : > { %1112 = vmatpush3.bf16.msra.mxu0 %v1178_v7  ;;  %1162 = vmatpush3.bf16.msra.mxu1 %v1178_v7 }
  0x22   : > { %1113 = vmatprep.subr.bf16.mxu0 %v1179_v8  ;;  %1155 = vmatprep.subr.bf16.mxu1 %v1179_v8 }
  0x25   : > { %1114 = vmatpush3.bf16.msra.mxu0 %v1179_v8  ;;  %1163 = vmatpush3.bf16.msra.mxu1 %v1179_v8 }
  0x26   : > { %1115 = vmatprep.subr.bf16.mxu0 %v1180_v9  ;;  %1156 = vmatprep.subr.bf16.mxu1 %v1180_v9 }
  0x29   : > { %1116 = vmatpush3.bf16.msra.mxu0 %v1180_v9  ;;  %1164 = vmatpush3.bf16.msra.mxu1 %v1180_v9 }
  0x2c   : > { %1118 = vmatmul.mubr.bf16.vlgmr.msra.gmra.mxu0 %v1183_v10  ;;  %1134 = vmatmul.mubr.bf16.vlgmr.msra.gmra.mxu1 %v1184_v11 }
  0x2d   : > { %1121 = vmatprep.mubr.bf16.mxu0 %v1185_v12  ;;  %1137 = vmatprep.mubr.bf16.mxu1 %v1186_v13 }
  0x34   : > { %1122 = vmatmul.mubr.bf16.gmra.mxu0 %v1187_v14  ;;  %1138 = vmatmul.mubr.bf16.gmra.mxu1 %v1188_v15 }
  0x35   : > { %1125 = vmatprep.mubr.bf16.mxu0 %v1189_v16  ;;  %1141 = vmatprep.mubr.bf16.mxu1 %v1190_v17 }
  0x3c   : > { %1126 = vmatmul.mubr.bf16.gmra.mxu0 %v1191_v18  ;;  %1142 = vmatmul.mubr.bf16.gmra.mxu1 %v1192_v19 }
  0x3d   : > { %1129 = vmatprep.mubr.bf16.mxu0 %v1193_v20  ;;  %1145 = vmatprep.mubr.bf16.mxu1 %v1194_v21 }
  0x44   : > { %1130 = vmatmul.mubr.bf16.gmra.mxu0 %v1195_v22  ;;  %1146 = vmatmul.mubr.bf16.gmra.mxu1 %v1196_v23 }
  0xec   : > { %v1119_v25 = vpop.f32.mrf.mxu0  ;;  %v1135_v26 = vpop.f32.mrf.mxu1 }
  0xed   : > { %v564_v27 = vmul.f32 %v1119_v25, %v1291_v24  ;;  %v580_v28 = vmul.f32 %v1135_v26, %v1291_v24 }
  0xee   : > { %v428_v30 = vpop.f32.mrf.mxu0  ;;  %v492_v31 = vpop.f32.mrf.mxu1 }
  0xef   : > { %v562_v32 = vmul.f32 %v1291_v24, %v428_v30  ;;  %v578_v33 = vmul.f32 %v1291_v24, %v492_v31  ;;  %v603_v36 = vadd.f32 %v1298_v29, %v564_v27  ;;  %v619_v37 = vadd.f32 %v1298_v29, %v580_v28 }
  0xf0   : > { %v1120_v34 = vpop.f32.mrf.mxu0  ;;  %v1136_v35 = vpop.f32.mrf.mxu1 }
  0xf1   : > { %v565_v38 = vmul.f32 %v1120_v34, %v1291_v24  ;;  %v581_v39 = vmul.f32 %v1136_v35, %v1291_v24  ;;  %v601_v42 = vadd.f32 %v1298_v29, %v562_v32  ;;  %v617_v43 = vadd.f32 %v1298_v29, %v578_v33 }
  0xf2   : > { %v431_v40 = vpop.f32.mrf.mxu0  ;;  %v495_v41 = vpop.f32.mrf.mxu1  ;;  %v635_v50 = vmax.f32 %v603_v36, 0.0  ;;  %v651_v51 = vmax.f32 %v619_v37, 0.0 }
  0xf3   : > { %v563_v44 = vmul.f32 %v1291_v24, %v431_v40  ;;  %v579_v45 = vmul.f32 %v1291_v24, %v495_v41  ;;  %v604_v46 = vadd.f32 %v1298_v29, %v565_v38  ;;  %v620_v47 = vadd.f32 %v1298_v29, %v581_v39 }
  0xf4   : > { %v1123_v48 = vpop.f32.mrf.mxu0  ;;  %v1139_v49 = vpop.f32.mrf.mxu1  ;;  %v633_v60 = vmax.f32 %v601_v42, 0.0  ;;  %v649_v61 = vmax.f32 %v617_v43, 0.0 }
  0xf5   : > { %v602_v52 = vadd.f32 %v1298_v29, %v563_v44  ;;  %v618_v53 = vadd.f32 %v1298_v29, %v579_v45  ;;  %v636_v54 = vmax.f32 %v604_v46, 0.0  ;;  %v652_v55 = vmax.f32 %v620_v47, 0.0 }
  0xf6   : > { %v568_v56 = vmul.f32 %v1123_v48, %v1291_v24  ;;  %v584_v57 = vmul.f32 %v1139_v49, %v1291_v24  ;;  %v444_v58 = vpop.f32.mrf.mxu0  ;;  %v508_v59 = vpop.f32.mrf.mxu1 }
  0xf7   : > { %v634_v62 = vmax.f32 %v602_v52, 0.0  ;;  %v650_v63 = vmax.f32 %v618_v53, 0.0  ;;  %v990_v0 = vpack.c.bf16 %v636_v54, %v635_v50  ;;  %v1030_v1 = vpack.c.bf16 %v652_v55, %v651_v51 }
  0xf8   : > { %v566_v2 = vmul.f32 %v1291_v24, %v444_v58  ;;  %v582_v3 = vmul.f32 %v1291_v24, %v508_v59  ;;  %v1124_v4 = vpop.f32.mrf.mxu0  ;;  %v1140_v5 = vpop.f32.mrf.mxu1  ;;  %v607_v8 = vadd.f32 %v1298_v29, %v568_v56  ;;  %v623_v9 = vadd.f32 %v1298_v29, %v584_v57 }
  0xf9   : > { %v985_v6 = vpack.c.bf16 %v634_v62, %v633_v60  ;;  %v1025_v7 = vpack.c.bf16 %v650_v63, %v649_v61  ;;  %1062 = vst [vmem:[%s1321_s20 + $0x8] sm:$0xff] %v990_v0   ;;  %1070 = vst [vmem:[%s1321_s20 + $0x48] sm:$0xff] %v1030_v1   ;;  %v569_v10 = vmul.f32 %v1124_v4, %v1291_v24 }
  0xfa   : > { %v585_v11 = vmul.f32 %v1140_v5, %v1291_v24  ;;  %v447_v12 = vpop.f32.mrf.mxu0  ;;  %v511_v13 = vpop.f32.mrf.mxu1  ;;  %v605_v14 = vadd.f32 %v1298_v29, %v566_v2  ;;  %v621_v15 = vadd.f32 %v1298_v29, %v582_v3  ;;  %v639_v27 = vmax.f32 %v607_v8, 0.0 }
  0xfb   : > { %986 = vst [vmem:[%s1321_s20] sm:$0xff] %v985_v6   ;;  %1069 = vst [vmem:[%s1321_s20 + $0x40] sm:$0xff] %v1025_v7   ;;  %v567_v16 = vmul.f32 %v1291_v24, %v447_v12  ;;  %v583_v17 = vmul.f32 %v1291_v24, %v511_v13  ;;  %v608_v18 = vadd.f32 %v1298_v29, %v569_v10  ;;  %v655_v28 = vmax.f32 %v623_v9, 0.0 }
  0xfc   : > { %v624_v19 = vadd.f32 %v1298_v29, %v585_v11  ;;  %v1127_v20 = vpop.f32.mrf.mxu0  ;;  %v1143_v21 = vpop.f32.mrf.mxu1  ;;  %v637_v34 = vmax.f32 %v605_v14, 0.0  ;;  %v653_v35 = vmax.f32 %v621_v15, 0.0 }
  0xfd   : > { %v606_v22 = vadd.f32 %v1298_v29, %v567_v16  ;;  %v622_v23 = vadd.f32 %v1298_v29, %v583_v17  ;;  %v572_v25 = vmul.f32 %v1127_v20, %v1291_v24  ;;  %v588_v26 = vmul.f32 %v1143_v21, %v1291_v24 }
  0xfe   : > { %v640_v30 = vmax.f32 %v608_v18, 0.0  ;;  %v656_v31 = vmax.f32 %v624_v19, 0.0  ;;  %v460_v32 = vpop.f32.mrf.mxu0  ;;  %v524_v33 = vpop.f32.mrf.mxu1 }
  0xff   : > { %v638_v36 = vmax.f32 %v606_v22, 0.0  ;;  %v654_v37 = vmax.f32 %v622_v23, 0.0  ;;  %v570_v40 = vmul.f32 %v1291_v24, %v460_v32  ;;  %v586_v41 = vmul.f32 %v1291_v24, %v524_v33 }
 0x100   : > { %v1000_v38 = vpack.c.bf16 %v640_v30, %v639_v27  ;;  %v1040_v39 = vpack.c.bf16 %v656_v31, %v655_v28  ;;  %v1128_v42 = vpop.f32.mrf.mxu0  ;;  %v1144_v43 = vpop.f32.mrf.mxu1  ;;  %v611_v46 = vadd.f32 %v1298_v29, %v572_v25  ;;  %v627_v47 = vadd.f32 %v1298_v29, %v588_v26 }
 0x101   : > { %v995_v44 = vpack.c.bf16 %v638_v36, %v637_v34  ;;  %v1035_v45 = vpack.c.bf16 %v654_v37, %v653_v35  ;;  %v573_v48 = vmul.f32 %v1128_v42, %v1291_v24  ;;  %v589_v49 = vmul.f32 %v1144_v43, %v1291_v24 }
 0x102   : > { %1064 = vst [vmem:[%s1321_s20 + $0x18] sm:$0xff] %v1000_v38   ;;  %1072 = vst [vmem:[%s1321_s20 + $0x58] sm:$0xff] %v1040_v39   ;;  %v463_v50 = vpop.f32.mrf.mxu0  ;;  %v527_v51 = vpop.f32.mrf.mxu1  ;;  %v609_v52 = vadd.f32 %v1298_v29, %v570_v40  ;;  %v625_v53 = vadd.f32 %v1298_v29, %v586_v41  ;;  %v643_v60 = vmax.f32 %v611_v46, 0.0  ;;  %v659_v61 = vmax.f32 %v627_v47, 0.0 }
 0x103   : > { %1063 = vst [vmem:[%s1321_s20 + $0x10] sm:$0xff] %v995_v44   ;;  %1071 = vst [vmem:[%s1321_s20 + $0x50] sm:$0xff] %v1035_v45   ;;  %v571_v54 = vmul.f32 %v1291_v24, %v463_v50  ;;  %v587_v55 = vmul.f32 %v1291_v24, %v527_v51  ;;  %v612_v56 = vadd.f32 %v1298_v29, %v573_v48 }
 0x104   : > { %v628_v57 = vadd.f32 %v1298_v29, %v589_v49  ;;  %v1131_v58 = vpop.f32.mrf.mxu0  ;;  %v1147_v59 = vpop.f32.mrf.mxu1  ;;  %v641_v6 = vmax.f32 %v609_v52, 0.0  ;;  %v657_v7 = vmax.f32 %v625_v53, 0.0 }
 0x105   : > { %v610_v62 = vadd.f32 %v1298_v29, %v571_v54  ;;  %v626_v63 = vadd.f32 %v1298_v29, %v587_v55  ;;  %v644_v0 = vmax.f32 %v612_v56, 0.0  ;;  %v576_v2 = vmul.f32 %v1131_v58, %v1291_v24 }
 0x106   : > { %v660_v1 = vmax.f32 %v628_v57, 0.0  ;;  %v592_v3 = vmul.f32 %v1147_v59, %v1291_v24  ;;  %v476_v4 = vpop.f32.mrf.mxu0  ;;  %v540_v5 = vpop.f32.mrf.mxu1 }
 0x107   : > { %v642_v8 = vmax.f32 %v610_v62, 0.0  ;;  %v658_v9 = vmax.f32 %v626_v63, 0.0  ;;  %v1010_v10 = vpack.c.bf16 %v644_v0, %v643_v60  ;;  %v574_v12 = vmul.f32 %v1291_v24, %v476_v4 }
 0x108   : > { %v1050_v11 = vpack.c.bf16 %v660_v1, %v659_v61  ;;  %v590_v13 = vmul.f32 %v1291_v24, %v540_v5  ;;  %v1132_v14 = vpop.f32.mrf.mxu0  ;;  %v1148_v15 = vpop.f32.mrf.mxu1  ;;  %v615_v18 = vadd.f32 %v1298_v29, %v576_v2  ;;  %v631_v19 = vadd.f32 %v1298_v29, %v592_v3 }
 0x109   : > { %v1005_v16 = vpack.c.bf16 %v642_v8, %v641_v6  ;;  %v1045_v17 = vpack.c.bf16 %v658_v9, %v657_v7  ;;  %1066 = vst [vmem:[%s1321_s20 + $0x28] sm:$0xff] %v1010_v10   ;;  %v577_v20 = vmul.f32 %v1132_v14, %v1291_v24  ;;  %v593_v21 = vmul.f32 %v1148_v15, %v1291_v24 }
 0x10a   : > { %1074 = vst [vmem:[%s1321_s20 + $0x68] sm:$0xff] %v1050_v11   ;;  %v479_v22 = vpop.f32.mrf.mxu0  ;;  %v543_v23 = vpop.f32.mrf.mxu1  ;;  %v613_v25 = vadd.f32 %v1298_v29, %v574_v12  ;;  %v629_v26 = vadd.f32 %v1298_v29, %v590_v13  ;;  %v647_v34 = vmax.f32 %v615_v18, 0.0  ;;  %v663_v35 = vmax.f32 %v631_v19, 0.0 }
 0x10b   : > { %1065 = vst [vmem:[%s1321_s20 + $0x20] sm:$0xff] %v1005_v16   ;;  %1073 = vst [vmem:[%s1321_s20 + $0x60] sm:$0xff] %v1045_v17   ;;  %v575_v27 = vmul.f32 %v1291_v24, %v479_v22  ;;  %v591_v28 = vmul.f32 %v1291_v24, %v543_v23  ;;  %v616_v30 = vadd.f32 %v1298_v29, %v577_v20 }
 0x10c   : > { %v632_v31 = vadd.f32 %v1298_v29, %v593_v21  ;;  %v645_v38 = vmax.f32 %v613_v25, 0.0  ;;  %v661_v39 = vmax.f32 %v629_v26, 0.0 }
 0x10d   : > { %v614_v32 = vadd.f32 %v1298_v29, %v575_v27  ;;  %v630_v33 = vadd.f32 %v1298_v29, %v591_v28  ;;  %v648_v36 = vmax.f32 %v616_v30, 0.0 }
 0x10e   : > { %v664_v37 = vmax.f32 %v632_v31, 0.0 }
 0x10f   : > { %v646_v40 = vmax.f32 %v614_v32, 0.0  ;;  %v662_v24 = vmax.f32 %v630_v33, 0.0  ;;  %v1020_v41 = vpack.c.bf16 %v648_v36, %v647_v34 }
 0x110   : > { %v1060_v42 = vpack.c.bf16 %v664_v37, %v663_v35 }
 0x111   : > { %v1015_v43 = vpack.c.bf16 %v646_v40, %v645_v38  ;;  %v1055_v44 = vpack.c.bf16 %v662_v24, %v661_v39  ;;  %1068 = vst [vmem:[%s1321_s20 + $0x38] sm:$0xff] %v1020_v41  }
 0x112   : > { %1076 = vst [vmem:[%s1321_s20 + $0x78] sm:$0xff] %v1060_v42  }
 0x113   : > { %1067 = vst [vmem:[%s1321_s20 + $0x30] sm:$0xff] %v1015_v43   ;;  %1075 = vst [vmem:[%s1321_s20 + $0x70] sm:$0xff] %v1055_v44  }
 0x114 PF: > { %s14_s15 = sadd.s32 1, %s1203_s15  }
 0x115   : > { %p11_p4 = scmp.ge.s32.totalorder %s14_s15, 4  }
 0x117   :  { %13 = sbr.rel (!%p11_p4) target bundleno = 1 (0x1), region = 66 }

// kernel: bottleneck_forward.5
= control target key start
LH: loop header
LB: loop body
LE: loop exit
PB: predicated region body
PF: predicated region fallthrough
CT: control target
= control target key end

     0   :  { %10 = vsyncpa [#allocation3], 0  ;;  %s1707_s0 = inlined_call_operand.vmem [shape: bf16[512,128], index: 0, kind: input, shape index: {}]   ;;  %s1708_s1 = inlined_call_operand.vmem [shape: bf16[128,128], index: 1, kind: input, shape index: {}]   ;;  %s1709_s2 = inlined_call_operand.vmem [shape: f32[1,128], index: 2, kind: input, shape index: {}]   ;;  %s1710_s3 = inlined_call_operand.vmem [shape: f32[1,128], index: 3, kind: input, shape index: {}]   ;;  %s1711_s4 = inlined_call_operand.vmem [shape: bf16[512,128], index: 4, kind: input, shape index: {}]   ;;  %s1712_s5 = inlined_call_operand.hbm [shape: f32[512,128], index: 5, kind: output, shape index: {}]  }
   0x1   :  { %12 = vsyncpa [#allocation3 + $0x1], 0  ;;  %s1296_s18 = smov 0   ;;  %s1298_s19 = smov 0  }
   0x2   :  { %s1300_s20 = smov 0   ;;  %s1302_s21 = smov 0  }
   0x3 LB: > { %s1317_s22 = sadd.s32 4294967295, %s1261_s21   ;;  %s928_s23 = sadd.s32 4294967294, %s1261_s21   ;;  %s1261_s21 = sphi %s1302_s21, %s1720_s21   ;;  %s1257_s20 = sphi %s1300_s20, %s1719_s20   ;;  %s1253_s19 = sphi %s1298_s19, %s1718_s19   ;;  %s1249_s18 = sphi %s1296_s18, %s1717_s18  }
   0x4   : > { %s1321_s24 = sadd.s32 1, %s1261_s21   ;;  %s140_s25 = sadd.s32 1, %s1257_s20 }
   0x5   : > { %s137_s26 = ssub.s32 %s1261_s21, %s1321_s24  ;;  %p150_p0 = scmp.ne.s32.totalorder %s1257_s20, %s1253_s19 }
   0x6   : > { %p138_p1 = scmp.eq.s32.totalorder %s137_s26, 0  ;;  %p151_p2 = scmp.eq.s32.totalorder %s1317_s22, 1 }
   0x7   : > { %p156_p3 = scmp.ne.s32.totalorder %s1253_s19, %s1249_s18  ;;  %p157_p4 = scmp.eq.s32.totalorder %s928_s23, 1 }
   0x8   : > { %s1332_s27 = scalar_select %p138_p1, %s1257_s20, %s140_s25  }
   0x9   : > { %p1334_p5 = por %p151_p2, %p150_p0  ;;  %p1338_p6 = por %p157_p4, %p156_p3 }
   0xa   : > { %p931_p7 = scmp.ge.s32.totalorder %s1261_s21, 1  ;;  %p202_p8 = scmp.lt.s32.totalorder %s1261_s21, 3 }
   0xc   : > { %p203_p9 = pnand %p931_p7, %p202_p8 }
   0xd   : > { %s933_s7 = sshll.u32 (!%p203_p9), %s1317_s22, 5  ;;  %s968_s26 = sshll.u32 (!%p203_p9), %s1317_s22, 12 }
   0xe   : > { %206 = sbr.rel (%p203_p9) target bundleno = 299 (0x12b), region = 40  ;;  %p236_p10 = scmp.lt.s32.totalorder (!%p203_p9), %s933_s7, 63 }
   0xf   : > { %s1657_s9 = scalar_lea.hbm (!%p203_p9), %s1712_s5, %s968_s26  ;;  %s1263_s11 = smov (!%p203_p9), [#allocation2]  }
  0x10   : > { %s1205_s13 = sshll.u32 (!%p203_p9), %s1263_s11, 4  ;;  %s1206_s13 = int_to_ptr.vmem [resolvable:$false] %s1205_s13 }
  0x13   : > { %v1177_v0 = vld [vmem:[%s1708_s1 + $0x38] sm:$0xff]   ;;  %v1178_v1 = vld [vmem:[%s1708_s1 + $0x30] sm:$0xff]   ;;  %s1722_s7 = smov (!%p236_p10, %s933_s7), 63  ;;  %v1179_v2 = vld [vmem:[%s1708_s1 + $0x28] sm:$0xff]  }
  0x14   : > { %1072 = vmatprep.subr.bf16.mxu0 %v1177_v0  ;;  %1120 = vmatprep.subr.bf16.mxu1 %v1177_v0  ;;  %s934_s12 = sshll.u32 %s1722_s7, 2  ;;  %v1180_v3 = vld [vmem:[%s1708_s1 + $0x20] sm:$0xff]   ;;  %v1181_v6 = vld [vmem:[%s1708_s1 + $0x18] sm:$0xff]   ;;  %v1182_v7 = vld [vmem:[%s1708_s1 + $0x10] sm:$0xff]  }
  0x15   : > { %1073 = vmatpush3.bf16.msra.mxu0 %v1177_v0  ;;  %1128 = vmatpush3.bf16.msra.mxu1 %v1177_v0  ;;  %s1362_s15 = scalar_lea.vmem %s1707_s0, %s934_s12  ;;  %v1183_v8 = vld [vmem:[%s1708_s1 + $0x8] sm:$0xff]   ;;  %v1184_v9 = vld [vmem:[%s1708_s1] sm:$0xff]   ;;  %s1400_s14 = scalar_lea.vmem %s1711_s4, %s934_s12 }
  0x16   : > { %1074 = vmatprep.subr.bf16.mxu0 %v1178_v1  ;;  %1121 = vmatprep.subr.bf16.mxu1 %v1178_v1  ;;  %v1185_v4 = vld [vmem:[%s1362_s15] sm:$0xff]   ;;  %v1187_v10 = vld [vmem:[%s1362_s15 + $0x8] sm:$0xff]   ;;  %v1189_v12 = vld [vmem:[%s1362_s15 + $0x10] sm:$0xff]  }
  0x17   : > { %v1186_v5 = vld [vmem:[%s1362_s15 + $0x40] sm:$0xff]   ;;  %1088 = vmatprep.mubr.bf16.mxu0 %v1185_v4  ;;  %v1188_v11 = vld [vmem:[%s1362_s15 + $0x48] sm:$0xff]   ;;  %v1190_v13 = vld [vmem:[%s1362_s15 + $0x50] sm:$0xff]  }
  0x18   : > { %1104 = vmatprep.mubr.bf16.mxu1 %v1186_v5  ;;  %v1191_v14 = vld [vmem:[%s1362_s15 + $0x18] sm:$0xff]   ;;  %v1193_v16 = vld [vmem:[%s1362_s15 + $0x20] sm:$0xff]   ;;  %v1195_v18 = vld [vmem:[%s1362_s15 + $0x28] sm:$0xff]  }
  0x19   : > { %1075 = vmatpush3.bf16.msra.mxu0 %v1178_v1  ;;  %1129 = vmatpush3.bf16.msra.mxu1 %v1178_v1  ;;  %v1192_v15 = vld [vmem:[%s1362_s15 + $0x58] sm:$0xff]   ;;  %v1194_v17 = vld [vmem:[%s1362_s15 + $0x60] sm:$0xff]   ;;  %v1196_v19 = vld [vmem:[%s1362_s15 + $0x68] sm:$0xff]  }
  0x1a   : > { %1076 = vmatprep.subr.bf16.mxu0 %v1179_v2  ;;  %1122 = vmatprep.subr.bf16.mxu1 %v1179_v2  ;;  %v1197_v20 = vld [vmem:[%s1362_s15 + $0x30] sm:$0xff]   ;;  %v1199_v22 = vld [vmem:[%s1362_s15 + $0x38] sm:$0xff]   ;;  %v1403_v24 = vld [vmem:[%s1400_s14 + $0x8] sm:$0xff]  }
  0x1b   : > { %v1198_v21 = vld [vmem:[%s1362_s15 + $0x70] sm:$0xff]   ;;  %v1200_v23 = vld [vmem:[%s1362_s15 + $0x78] sm:$0xff]   ;;  %v1406_v25 = vld [vmem:[%s1400_s14 + $0x48] sm:$0xff]   ;;  %v975_v32 = vunpack.c.l.bf16 %v1403_v24  ;;  %v976_v37 = vunpack.c.h.bf16 %v1403_v24  ;;  %s232_s15 = sand.u32 1, %s1253_s19  }
  0x1c   : > { %v1409_v26 = vld [vmem:[%s1400_s14] sm:$0xff]   ;;  %v1415_v28 = vld [vmem:[%s1400_s14 + $0x18] sm:$0xff]   ;;  %v1421_v30 = vld [vmem:[%s1400_s14 + $0x10] sm:$0xff]   ;;  %v1007_v33 = vunpack.c.l.bf16 %v1406_v25  ;;  %v1008_v38 = vunpack.c.h.bf16 %v1406_v25  ;;  %s1491_s23 = sshll.u32 %s232_s15, 8  ;;  %s1667_s22 = scalar_lea.sflag [#allocation3], %s232_s15 }
  0x1d   : > { %1077 = vmatpush3.bf16.msra.mxu0 %v1179_v2  ;;  %1130 = vmatpush3.bf16.msra.mxu1 %v1179_v2  ;;  %v1412_v27 = vld [vmem:[%s1400_s14 + $0x40] sm:$0xff]   ;;  %v1418_v29 = vld [vmem:[%s1400_s14 + $0x58] sm:$0xff]   ;;  %v1424_v31 = vld [vmem:[%s1400_s14 + $0x50] sm:$0xff]   ;;  %v971_v34 = vunpack.c.l.bf16 %v1409_v26  ;;  %v972_v39 = vunpack.c.h.bf16 %v1409_v26  ;;  %v983_v45 = vunpack.c.l.bf16 %v1415_v28  ;;  %v979_v47 = vunpack.c.l.bf16 %v1421_v30  ;;  %s1516_s25 = scalar_lea.vmem [#allocation2], %s1491_s23 }
  0x1e   : > { %1078 = vmatprep.subr.bf16.mxu0 %v1180_v3  ;;  %1123 = vmatprep.subr.bf16.mxu1 %v1180_v3  ;;  %v1003_v35 = vunpack.c.l.bf16 %v1412_v27  ;;  %v1431_v36 = vld [vmem:[%s1400_s14 + $0x28] sm:$0xff]   ;;  %v1004_v40 = vunpack.c.h.bf16 %v1412_v27  ;;  %v1441_v42 = vld [vmem:[%s1400_s14 + $0x20] sm:$0xff]   ;;  %v1015_v46 = vunpack.c.l.bf16 %v1418_v29  ;;  %v1011_v48 = vunpack.c.l.bf16 %v1424_v31  ;;  %v1460_v53 = vld [vmem:[%s1400_s14 + $0x38] sm:$0xff]   ;;  %s854_s30 = sshll.u32 %s1516_s25, 4  ;;  %s1659_s30 = int_to_ptr.vmem [resolvable:$true] %s854_s30 }
  0x1f   : > { %v1438_v41 = vld [vmem:[%s1400_s14 + $0x68] sm:$0xff]   ;;  %v1444_v43 = vld [vmem:[%s1400_s14 + $0x60] sm:$0xff]   ;;  %v984_v49 = vunpack.c.h.bf16 %v1415_v28  ;;  %v1016_v50 = vunpack.c.h.bf16 %v1418_v29  ;;  %v980_v51 = vunpack.c.h.bf16 %v1421_v30  ;;  %v1012_v52 = vunpack.c.h.bf16 %v1424_v31  ;;  %v1463_v54 = vld [vmem:[%s1400_s14 + $0x78] sm:$0xff]   ;;  %s1201_s10 = scalar_lea.vmem %s1659_s30, 4096  ;;  %p1208_p0 = scmp.lt.s32.totalorder %s1659_s30, %s1206_s13 }
  0x20   : > { %v1449_v44 = vld [vmem:[%s1709_s2] ss:$0 sm:$0xff]  ;;  %v991_v58 = vunpack.c.l.bf16 %v1431_v36  ;;  %v1023_v59 = vunpack.c.l.bf16 %v1438_v41  ;;  %v987_v60 = vunpack.c.l.bf16 %v1441_v42  ;;  %v1019_v61 = vunpack.c.l.bf16 %v1444_v43  ;;  %v1480_v2 = vld [vmem:[%s1400_s14 + $0x30] sm:$0xff]   ;;  %p1202_p11 = scmp.ne.s32.totalorder %s1659_s30, %s1201_s10 }
  0x21   : > { %1079 = vmatpush3.bf16.msra.mxu0 %v1180_v3  ;;  %1131 = vmatpush3.bf16.msra.mxu1 %v1180_v3  ;;  %v1469_v56 = vld [vmem:[%s1710_s3] ss:$0 sm:$0xff]  ;;  %v992_v0 = vunpack.c.h.bf16 %v1431_v36  ;;  %v1024_v1 = vunpack.c.h.bf16 %v1438_v41  ;;  %v1483_v3 = vld [vmem:[%s1400_s14 + $0x70] sm:$0xff]   ;;  %s1207_s14 = scalar_lea.vmem %s1206_s13, 8192 }
  0x22   : > { %1080 = vmatprep.subr.bf16.mxu0 %v1181_v6  ;;  %1124 = vmatprep.subr.bf16.mxu1 %v1181_v6  ;;  %p1203_p12 = pnand %p1202_p11, %p1334_p5  ;;  %p1209_p1 = scmp.lt.s32.totalorder %s1207_s14, %s1201_s10 }
  0x24   : > { %p1204_p13 = pneg %p1203_p12  ;;  %p1210_p2 = por %p1209_p1, %p1208_p0 }
  0x25   : > { %1081 = vmatpush3.bf16.msra.mxu0 %v1181_v6  ;;  %1132 = vmatpush3.bf16.msra.mxu1 %v1181_v6  ;;  %v988_v6 = vunpack.c.h.bf16 %v1441_v42 }
  0x26   : > { %1082 = vmatprep.subr.bf16.mxu0 %v1182_v7  ;;  %1125 = vmatprep.subr.bf16.mxu1 %v1182_v7  ;;  %p1211_p3 = pnand %p1210_p2, %p1204_p13 }
  0x29   : > { %1083 = vmatpush3.bf16.msra.mxu0 %v1182_v7  ;;  %1133 = vmatpush3.bf16.msra.mxu1 %v1182_v7  ;;  %v1020_v7 = vunpack.c.h.bf16 %v1444_v43 }
  0x2a   : > { %1084 = vmatprep.subr.bf16.mxu0 %v1183_v8  ;;  %1126 = vmatprep.subr.bf16.mxu1 %v1183_v8 }
  0x2d   : > { %1085 = vmatpush3.bf16.msra.mxu0 %v1183_v8  ;;  %1134 = vmatpush3.bf16.msra.mxu1 %v1183_v8  ;;  %v999_v8 = vunpack.c.l.bf16 %v1460_v53 }
  0x2e   : > { %1086 = vmatprep.subr.bf16.mxu0 %v1184_v9  ;;  %1127 = vmatprep.subr.bf16.mxu1 %v1184_v9 }
  0x31   : > { %1087 = vmatpush3.bf16.msra.mxu0 %v1184_v9  ;;  %1135 = vmatpush3.bf16.msra.mxu1 %v1184_v9  ;;  %v1031_v9 = vunpack.c.l.bf16 %v1463_v54 }
  0x34   : > { %1089 = vmatmul.mubr.bf16.vlgmr.msra.gmra.mxu0 %v1187_v10  ;;  %1105 = vmatmul.mubr.bf16.vlgmr.msra.gmra.mxu1 %v1188_v11 }
  0x35   : > { %1092 = vmatprep.mubr.bf16.mxu0 %v1189_v12  ;;  %1108 = vmatprep.mubr.bf16.mxu1 %v1190_v13 }
  0x3c   : > { %1093 = vmatmul.mubr.bf16.gmra.mxu0 %v1191_v14  ;;  %1109 = vmatmul.mubr.bf16.gmra.mxu1 %v1192_v15 }
  0x3d   : > { %1096 = vmatprep.mubr.bf16.mxu0 %v1193_v16  ;;  %1112 = vmatprep.mubr.bf16.mxu1 %v1194_v17  ;;  %v995_v16 = vunpack.c.l.bf16 %v1480_v2 }
  0x44   : > { %1097 = vmatmul.mubr.bf16.gmra.mxu0 %v1195_v18  ;;  %1113 = vmatmul.mubr.bf16.gmra.mxu1 %v1196_v19  ;;  %v1032_v19 = vunpack.c.h.bf16 %v1463_v54 }
  0x45   : > { %1100 = vmatprep.mubr.bf16.mxu0 %v1197_v20  ;;  %1116 = vmatprep.mubr.bf16.mxu1 %v1198_v21 }
  0x4c   : > { %1101 = vmatmul.mubr.bf16.gmra.mxu0 %v1199_v22  ;;  %1117 = vmatmul.mubr.bf16.gmra.mxu1 %v1200_v23 }
  0xf4   : > { %v1090_v55 = vpop.f32.mrf.mxu0  ;;  %v1106_v57 = vpop.f32.mrf.mxu1 }
  0xf5   : > { %v611_v62 = vmul.f32 %v1090_v55, %v1449_v44  ;;  %v627_v63 = vmul.f32 %v1106_v57, %v1449_v44 }
  0xf6   : > { %v475_v4 = vpop.f32.mrf.mxu0  ;;  %v539_v5 = vpop.f32.mrf.mxu1 }
  0xf7   : > { %v650_v10 = vadd.f32 %v1469_v56, %v611_v62  ;;  %v666_v11 = vadd.f32 %v1469_v56, %v627_v63  ;;  %v609_v12 = vmul.f32 %v1449_v44, %v475_v4  ;;  %v625_v13 = vmul.f32 %v1449_v44, %v539_v5 }
  0xf8   : > { %v1091_v14 = vpop.f32.mrf.mxu0  ;;  %v1107_v15 = vpop.f32.mrf.mxu1  ;;  %v996_v4 = vunpack.c.h.bf16 %v1480_v2  ;;  %v1028_v5 = vunpack.c.h.bf16 %v1483_v3 }
  0xf9   : > { %v746_v20 = vadd.f32 %v975_v32, %v650_v10  ;;  %v762_v21 = vadd.f32 %v1007_v33, %v666_v11  ;;  %v648_v22 = vadd.f32 %v1469_v56, %v609_v12  ;;  %v664_v23 = vadd.f32 %v1469_v56, %v625_v13 }
  0xfa   : > { %v612_v55 = vmul.f32 %v1091_v14, %v1449_v44  ;;  %v628_v57 = vmul.f32 %v1107_v15, %v1449_v44  ;;  %v478_v62 = vpop.f32.mrf.mxu0  ;;  %v542_v63 = vpop.f32.mrf.mxu1 }
  0xfb   : > { %v778_v18 = vmax.f32 %v746_v20, 0.0  ;;  %v794_v17 = vmax.f32 %v762_v21, 0.0  ;;  %v744_v32 = vadd.f32 %v971_v34, %v648_v22  ;;  %v760_v33 = vadd.f32 %v1003_v35, %v664_v23 }
  0xfc   : > { %v651_v10 = vadd.f32 %v1469_v56, %v612_v55  ;;  %v667_v11 = vadd.f32 %v1469_v56, %v628_v57  ;;  %v610_v12 = vmul.f32 %v1449_v44, %v478_v62  ;;  %v626_v13 = vmul.f32 %v1449_v44, %v542_v63  ;;  %v1094_v14 = vpop.f32.mrf.mxu0  ;;  %v1110_v15 = vpop.f32.mrf.mxu1 }
  0xfd   : > { %810 = vst [vmem:[%s1516_s25 + $0x10] sm:$0xff] %v778_v18  ;;  %826 = vst [vmem:[%s1516_s25 + $0x90] sm:$0xff] %v794_v17  ;;  %v776_v34 = vmax.f32 %v744_v32, 0.0  ;;  %v792_v35 = vmax.f32 %v760_v33, 0.0  ;;  %v615_v20 = vmul.f32 %v1094_v14, %v1449_v44  ;;  %v631_v21 = vmul.f32 %v1110_v15, %v1449_v44 }
  0xfe   : > { %v747_v22 = vadd.f32 %v976_v37, %v651_v10  ;;  %v763_v23 = vadd.f32 %v1008_v38, %v667_v11  ;;  %v649_v55 = vadd.f32 %v1469_v56, %v610_v12  ;;  %v665_v57 = vadd.f32 %v1469_v56, %v626_v13  ;;  %v491_v62 = vpop.f32.mrf.mxu0  ;;  %v555_v63 = vpop.f32.mrf.mxu1 }
  0xff   : > { %808 = vst [vmem:[%s1516_s25] sm:$0xff] %v776_v34  ;;  %824 = vst [vmem:[%s1516_s25 + $0x80] sm:$0xff] %v792_v35  ;;  %v654_v17 = vadd.f32 %v1469_v56, %v615_v20  ;;  %v670_v18 = vadd.f32 %v1469_v56, %v631_v21  ;;  %v613_v24 = vmul.f32 %v1449_v44, %v491_v62 }
 0x100   : > { %v629_v37 = vmul.f32 %v1449_v44, %v555_v63  ;;  %v779_v25 = vmax.f32 %v747_v22, 0.0  ;;  %v795_v38 = vmax.f32 %v763_v23, 0.0  ;;  %v745_v32 = vadd.f32 %v972_v39, %v649_v55  ;;  %v1095_v10 = vpop.f32.mrf.mxu0  ;;  %v1111_v11 = vpop.f32.mrf.mxu1 }
 0x101   : > { %v761_v33 = vadd.f32 %v1004_v40, %v665_v57  ;;  %v750_v12 = vadd.f32 %v983_v45, %v654_v17  ;;  %v766_v13 = vadd.f32 %v1015_v46, %v670_v18  ;;  %v652_v14 = vadd.f32 %v1469_v56, %v613_v24 }
 0x102   : > { %v668_v15 = vadd.f32 %v1469_v56, %v629_v37  ;;  %811 = vst [vmem:[%s1516_s25 + $0x18] sm:$0xff] %v779_v25  ;;  %827 = vst [vmem:[%s1516_s25 + $0x98] sm:$0xff] %v795_v38  ;;  %v777_v26 = vmax.f32 %v745_v32, 0.0  ;;  %v616_v27 = vmul.f32 %v1095_v10, %v1449_v44  ;;  %v632_v40 = vmul.f32 %v1111_v11, %v1449_v44  ;;  %v494_v45 = vpop.f32.mrf.mxu0  ;;  %v558_v34 = vpop.f32.mrf.mxu1 }
 0x103   : > { %v793_v39 = vmax.f32 %v761_v33, 0.0  ;;  %v782_v35 = vmax.f32 %v750_v12, 0.0  ;;  %v798_v20 = vmax.f32 %v766_v13, 0.0  ;;  %v748_v46 = vadd.f32 %v979_v47, %v652_v14 }
 0x104   : > { %v764_v21 = vadd.f32 %v1011_v48, %v668_v15  ;;  %809 = vst [vmem:[%s1516_s25 + $0x8] sm:$0xff] %v777_v26  ;;  %v655_v22 = vadd.f32 %v1469_v56, %v616_v27  ;;  %v671_v23 = vadd.f32 %v1469_v56, %v632_v40  ;;  %v614_v55 = vmul.f32 %v1449_v44, %v494_v45  ;;  %v1098_v62 = vpop.f32.mrf.mxu0  ;;  %v1114_v63 = vpop.f32.mrf.mxu1 }
 0x105   : > { %825 = vst [vmem:[%s1516_s25 + $0x88] sm:$0xff] %v793_v39  ;;  %v630_v57 = vmul.f32 %v1449_v44, %v558_v34  ;;  %814 = vst [vmem:[%s1516_s25 + $0x30] sm:$0xff] %v782_v35  ;;  %v780_v47 = vmax.f32 %v748_v46, 0.0  ;;  %v619_v48 = vmul.f32 %v1098_v62, %v1449_v44  ;;  %v635_v18 = vmul.f32 %v1114_v63, %v1449_v44 }
 0x106   : > { %830 = vst [vmem:[%s1516_s25 + $0xb0] sm:$0xff] %v798_v20  ;;  %v796_v17 = vmax.f32 %v764_v21, 0.0  ;;  %v751_v24 = vadd.f32 %v984_v49, %v655_v22  ;;  %v767_v37 = vadd.f32 %v1016_v50, %v671_v23  ;;  %v653_v25 = vadd.f32 %v1469_v56, %v614_v55  ;;  %v507_v32 = vpop.f32.mrf.mxu0  ;;  %v571_v33 = vpop.f32.mrf.mxu1 }
 0x107   : > { %v669_v38 = vadd.f32 %v1469_v56, %v630_v57  ;;  %812 = vst [vmem:[%s1516_s25 + $0x20] sm:$0xff] %v780_v47  ;;  %v658_v10 = vadd.f32 %v1469_v56, %v619_v48  ;;  %v674_v11 = vadd.f32 %v1469_v56, %v635_v18  ;;  %v617_v28 = vmul.f32 %v1449_v44, %v507_v32 }
 0x108   : > { %828 = vst [vmem:[%s1516_s25 + $0xa0] sm:$0xff] %v796_v17  ;;  %v633_v49 = vmul.f32 %v1449_v44, %v571_v33  ;;  %v783_v29 = vmax.f32 %v751_v24, 0.0  ;;  %v799_v50 = vmax.f32 %v767_v37, 0.0  ;;  %v749_v12 = vadd.f32 %v980_v51, %v653_v25  ;;  %v1099_v14 = vpop.f32.mrf.mxu0  ;;  %v1115_v15 = vpop.f32.mrf.mxu1 }
 0x109   : > { %v765_v13 = vadd.f32 %v1012_v52, %v669_v38  ;;  %v754_v26 = vadd.f32 %v991_v58, %v658_v10  ;;  %v770_v39 = vadd.f32 %v1023_v59, %v674_v11  ;;  %v656_v27 = vadd.f32 %v1469_v56, %v617_v28 }
 0x10a   : > { %v672_v40 = vadd.f32 %v1469_v56, %v633_v49  ;;  %815 = vst [vmem:[%s1516_s25 + $0x38] sm:$0xff] %v783_v29  ;;  %831 = vst [vmem:[%s1516_s25 + $0xb8] sm:$0xff] %v799_v50  ;;  %v781_v30 = vmax.f32 %v749_v12, 0.0  ;;  %v620_v31 = vmul.f32 %v1099_v14, %v1449_v44  ;;  %v636_v52 = vmul.f32 %v1115_v15, %v1449_v44  ;;  %v510_v58 = vpop.f32.mrf.mxu0  ;;  %v574_v45 = vpop.f32.mrf.mxu1 }
 0x10b   : > { %v797_v51 = vmax.f32 %v765_v13, 0.0  ;;  %v786_v34 = vmax.f32 %v754_v26, 0.0  ;;  %v802_v35 = vmax.f32 %v770_v39, 0.0  ;;  %v752_v59 = vadd.f32 %v987_v60, %v656_v27 }
 0x10c   : > { %v768_v20 = vadd.f32 %v1019_v61, %v672_v40  ;;  %813 = vst [vmem:[%s1516_s25 + $0x28] sm:$0xff] %v781_v30  ;;  %v659_v46 = vadd.f32 %v1469_v56, %v620_v31  ;;  %v675_v21 = vadd.f32 %v1469_v56, %v636_v52  ;;  %v618_v22 = vmul.f32 %v1449_v44, %v510_v58  ;;  %v1102_v55 = vpop.f32.mrf.mxu0  ;;  %v1118_v57 = vpop.f32.mrf.mxu1 }
 0x10d   : > { %829 = vst [vmem:[%s1516_s25 + $0xa8] sm:$0xff] %v797_v51  ;;  %v634_v23 = vmul.f32 %v1449_v44, %v574_v45  ;;  %818 = vst [vmem:[%s1516_s25 + $0x50] sm:$0xff] %v786_v34  ;;  %v784_v60 = vmax.f32 %v752_v59, 0.0  ;;  %v623_v61 = vmul.f32 %v1102_v55, %v1449_v44  ;;  %v639_v63 = vmul.f32 %v1118_v57, %v1449_v44 }
 0x10e   : > { %834 = vst [vmem:[%s1516_s25 + $0xd0] sm:$0xff] %v802_v35  ;;  %v800_v62 = vmax.f32 %v768_v20, 0.0  ;;  %v755_v47 = vadd.f32 %v992_v0, %v659_v46  ;;  %v771_v17 = vadd.f32 %v1024_v1, %v675_v21  ;;  %v657_v48 = vadd.f32 %v1469_v56, %v618_v22  ;;  %v523_v24 = vpop.f32.mrf.mxu0  ;;  %v587_v37 = vpop.f32.mrf.mxu1 }
 0x10f   : > { %v673_v18 = vadd.f32 %v1469_v56, %v634_v23  ;;  %816 = vst [vmem:[%s1516_s25 + $0x40] sm:$0xff] %v784_v60  ;;  %v662_v25 = vadd.f32 %v1469_v56, %v623_v61  ;;  %v678_v38 = vadd.f32 %v1469_v56, %v639_v63  ;;  %v621_v36 = vmul.f32 %v1449_v44, %v523_v24 }
 0x110   : > { %832 = vst [vmem:[%s1516_s25 + $0xc0] sm:$0xff] %v800_v62  ;;  %v637_v0 = vmul.f32 %v1449_v44, %v587_v37  ;;  %v787_v41 = vmax.f32 %v755_v47, 0.0  ;;  %v803_v1 = vmax.f32 %v771_v17, 0.0  ;;  %v753_v32 = vadd.f32 %v988_v6, %v657_v48  ;;  %v1103_v10 = vpop.f32.mrf.mxu0  ;;  %v1119_v11 = vpop.f32.mrf.mxu1 }
 0x111   : > { %v769_v33 = vadd.f32 %v1020_v7, %v673_v18  ;;  %v758_v28 = vadd.f32 %v999_v8, %v662_v25  ;;  %v774_v49 = vadd.f32 %v1031_v9, %v678_v38  ;;  %v660_v29 = vadd.f32 %v1469_v56, %v621_v36 }
 0x112   : > { %v676_v50 = vadd.f32 %v1469_v56, %v637_v0  ;;  %819 = vst [vmem:[%s1516_s25 + $0x58] sm:$0xff] %v787_v41  ;;  %835 = vst [vmem:[%s1516_s25 + $0xd8] sm:$0xff] %v803_v1  ;;  %v785_v42 = vmax.f32 %v753_v32, 0.0  ;;  %v624_v6 = vmul.f32 %v1103_v10, %v1449_v44  ;;  %v640_v7 = vmul.f32 %v1119_v11, %v1449_v44  ;;  %v526_v8 = vpop.f32.mrf.mxu0  ;;  %v590_v12 = vpop.f32.mrf.mxu1 }
 0x113   : > { %v801_v43 = vmax.f32 %v769_v33, 0.0  ;;  %v790_v13 = vmax.f32 %v758_v28, 0.0  ;;  %v806_v14 = vmax.f32 %v774_v49, 0.0  ;;  %v756_v9 = vadd.f32 %v995_v16, %v660_v29 }
 0x114   : > { %v1715_v15 = vunpack.c.l.bf16 %v1483_v3  ;;  %817 = vst [vmem:[%s1516_s25 + $0x48] sm:$0xff] %v785_v42  ;;  %v663_v39 = vadd.f32 %v1469_v56, %v624_v6  ;;  %v679_v27 = vadd.f32 %v1469_v56, %v640_v7  ;;  %v622_v40 = vmul.f32 %v1449_v44, %v526_v8 }
 0x115   : > { %833 = vst [vmem:[%s1516_s25 + $0xc8] sm:$0xff] %v801_v43  ;;  %v638_v30 = vmul.f32 %v1449_v44, %v590_v12  ;;  %822 = vst [vmem:[%s1516_s25 + $0x70] sm:$0xff] %v790_v13  ;;  %v788_v16 = vmax.f32 %v756_v9, 0.0  ;;  %v1716_v31 = vunpack.c.h.bf16 %v1460_v53 }
 0x116   : > { %v772_v26 = vadd.f32 %v1715_v15, %v676_v50  ;;  %838 = vst [vmem:[%s1516_s25 + $0xf0] sm:$0xff] %v806_v14  ;;  %v775_v58 = vadd.f32 %v1032_v19, %v679_v27  ;;  %v661_v45 = vadd.f32 %v1469_v56, %v622_v40 }
 0x117   : > { %v759_v52 = vadd.f32 %v1716_v31, %v663_v39  ;;  %v677_v34 = vadd.f32 %v1469_v56, %v638_v30  ;;  %820 = vst [vmem:[%s1516_s25 + $0x60] sm:$0xff] %v788_v16 }
 0x118   : > { %v804_v51 = vmax.f32 %v772_v26, 0.0  ;;  %v807_v35 = vmax.f32 %v775_v58, 0.0  ;;  %v757_v53 = vadd.f32 %v996_v4, %v661_v45 }
 0x119   : > { %v791_v44 = vmax.f32 %v759_v52, 0.0  ;;  %v773_v54 = vadd.f32 %v1028_v5, %v677_v34 }
 0x11a   : > { %836 = vst [vmem:[%s1516_s25 + $0xe0] sm:$0xff] %v804_v51  ;;  %839 = vst [vmem:[%s1516_s25 + $0xf8] sm:$0xff] %v807_v35  ;;  %v789_v56 = vmax.f32 %v757_v53, 0.0 }
 0x11b   : > { %823 = vst [vmem:[%s1516_s25 + $0x78] sm:$0xff] %v791_v44  ;;  %v805_v19 = vmax.f32 %v773_v54, 0.0 }
 0x11c   : > { %821 = vst [vmem:[%s1516_s25 + $0x68] sm:$0xff] %v789_v56 }
 0x11d   : > { %837 = vst [vmem:[%s1516_s25 + $0xe8] sm:$0xff] %v805_v19 }
 0x11e   : > { %1214 = shalt.err (!%p1211_p3)
}
 0x11f   : > { %s1215_s7 = scalar_lea.hbm %s1657_s9, 4096  ;;  %s1219_s16 = scalar_lea.hbm %s1712_s5, 8192 }
 0x120   : > { %p1216_p4 = scmp.ne.s32.totalorder %s1657_s9, %s1215_s7  ;;  %p1220_p9 = scmp.lt.s32.totalorder %s1657_s9, %s1712_s5 }
 0x121   : > { %p1221_p10 = scmp.lt.s32.totalorder %s1219_s16, %s1215_s7 }
 0x122   : > { %p1217_p7 = pnand %p1216_p4, %p1334_p5 }
 0x123   : > { %p1222_p11 = por %p1221_p10, %p1220_p9 }
 0x124   : > { %p1218_p8 = pneg %p1217_p7 }
 0x126   : > { %p1223_p12 = pnand %p1222_p11, %p1218_p8 }
 0x128   : > { %1226 = shalt.err (!%p1223_p12)
}
 0x129   : > { %s1264_s25 = smov 128   ;;  %s1265_s26 = smov 8  }
 0x12a   : > { %1136 = dma.vmem_to_hbm [thread:$0]  (%p1334_p5), %s1659_s30, 4096, %s1657_s9, %s1667_s22, %s1264_s25, %s1264_s25, %s1265_s26  }
 0x12b PF: > { %p1142_p13 = scmp.ge.s32.totalorder %s1261_s21, 2  ;;  %s869_s6 = sand.u32 1, %s1249_s18  }
 0x12c   : > { %s870_s8 = scalar_lea.sflag [#allocation3], %s869_s6 }
 0x12d   : > { %p1139_p0 = pnand %p1142_p13, %p1338_p6 }
 0x12f   : > { %p1140_p1 = pneg %p1139_p0 }
 0x131   : > { %1244 = dma.done.wait (%p1140_p1), %s870_s8, 4096  }
 0x132   : > { %1246 = vsyncadd (%p1140_p1), %s870_s8, 4294963200  ;;  %p15_p2 = scmp.ge.s32.totalorder %s1321_s24, 4   ;;  %s1717_s18 = smov %s1253_s19 }
 0x133   : > { %s1718_s19 = smov %s1257_s20  ;;  %s1719_s20 = smov %s1332_s27 }
 0x134   : > { %s1720_s21 = smov %s1321_s24  ;;  %17 = sbr.rel (!%p15_p2) target bundleno = 3 (0x3), region = 78 }
 0x139   :  { %875 = vsyncpa [#allocation3], 1 }
 0x13a   :  { %877 = vsyncpa [#allocation3 + $0x1], 1 }

// kernel: bottleneck_forward.4
= control target key start
LH: loop header
LB: loop body
LE: loop exit
PB: predicated region body
PF: predicated region fallthrough
CT: control target
= control target key end

     0   :  { %s3254_s15 = smov 0   ;;  %s3256_s16 = smov 0   ;;  %s3807_s0 = inlined_call_operand.vmem [shape: bf16[2,6,100,128], index: 0, kind: input, shape index: {}]   ;;  %s3808_s1 = inlined_call_operand.vmem [shape: bf16[3,9,128,128], index: 1, kind: input, shape index: {}]   ;;  %s3809_s2 = inlined_call_operand.vmem [shape: f32[1,128], index: 2, kind: input, shape index: {}]   ;;  %s3810_s3 = inlined_call_operand.vmem [shape: f32[1,128], index: 3, kind: input, shape index: {}]   ;;  %s3811_s4 = inlined_call_operand.vmem [shape: bf16[2,4,78,128], index: 4, kind: output, shape index: {}]  }
   0x1   :  { %s3258_s17 = smov 0   ;;  %s3260_s18 = smov 0  }
   0x2   :  { %s3262_s19 = smov 0   ;;  %s3264_s20 = smov 0  }
   0x3   :  { %s3266_s21 = smov 0  }
   0x4 LB: > { %s26_s22 = sadd.s32 1, %s3212_s18  ;;  %s29_s23 = sadd.s32 1, %s3216_s19  ;;  %s3224_s21 = sphi %s3266_s21, %s14_s21   ;;  %s3220_s20 = sphi %s3264_s20, %s3819_s20   ;;  %s3216_s19 = sphi %s3262_s19, %s3818_s19   ;;  %s3212_s18 = sphi %s3260_s18, %s3817_s18   ;;  %s3208_s17 = sphi %s3258_s17, %s3816_s17   ;;  %s3204_s16 = sphi %s3256_s16, %s3815_s16   ;;  %s3200_s15 = sphi %s3254_s15, %s3814_s15  }
   0x5   : > { %p27_p0 = scmp.ge.s32.totalorder %s26_s22, 3  ;;  %p2270_p1 = scmp.ge.s32.totalorder %s3224_s21, 1 }
   0x6   : > { %p203_p2 = scmp.lt.s32.totalorder %s3224_s21, 25  ;;  %s33_s24 = sadd.s32 1, %s3220_s20 }
   0x7   : > { %s3821_s22 = smov (%p27_p0, %s26_s22), 0  ;;  %s3823_s23 = smov (!%p27_p0, %s29_s23), %s3216_s19 }
   0x8   : > { %p204_p3 = pnand %p2270_p1, %p203_p2  ;;  %p31_p4 = scmp.ge.s32.totalorder %s3823_s23, 4 }
   0x9   : > { %s243_s25 = sadd.s32 (!%p204_p3), %s3200_s15, %s3204_s16  ;;  %p244_p6 = scmp.lt.s32.totalorder (!%p204_p3), %s3208_s17, 1 }
   0xa   : > { %s3825_s23 = smov (%p31_p4, %s3823_s23), 0  ;;  %s3827_s24 = smov (!%p31_p4, %s33_s24), %s3220_s20 }
   0xb   : > { %p35_p5 = scmp.ge.s32.totalorder %s3827_s24, 2  ;;  %207 = sbr.rel (%p204_p3) target bundleno = 459 (0x1cb), region = 36 }
   0xc   : > { %p246_p7 = scmp.lt.s32.totalorder (!%p204_p3), %s243_s25, 5  ;;  %p254_p8 = scmp.lt.s32.totalorder (!%p204_p3), %s3200_s15, 2 }
   0xd   : > { %s3829_s24 = smov (%p35_p5, %s3827_s24), 0  ;;  %p261_p9 = scmp.lt.s32.totalorder (!%p204_p3), %s3204_s16, 3 }
   0xe   : > { %3812 = sst [smem:[#allocation3_spill]] %s3829_s24  ;;  %p2274_p10 = scmp.ne.s32.totalorder (!%p204_p3), %s3200_s15, 0 }
  0x10   : > { %s3831_s17 = smov (!%p244_p6, %s3208_s17), 1  ;;  %s3833_s25 = smov (!%p246_p7, %s243_s25), 5 }
  0x11   : > { %s3008_s26 = smul.u32 78, %s3831_s17  ;;  %s3835_s16 = smov (!%p261_p9, %s3204_s16), 3 }
  0x12   : > { %s3007_s27 = smul.u32 13, %s3833_s25 }
  0x13   : > { %s255_s28 = scalar_select %p254_p8, %s3200_s15, 2 }
  0x14   : > { %s250_s29 = sadd.s32 %s3008_s26, %s3007_s27  ;;  %s3011_s12 = smul.u32 40, %s3831_s17 }
  0x15   : > { %s2271_s30 = sshll.u32 %s250_s29, 2  ;;  %s3009_s5 = smul.u32 576, %s255_s28 }
  0x16   : > { %s3308_s8 = scalar_lea.vmem %s3807_s0, %s2271_s30  ;;  %s3010_s13 = smul.u32 10, %s3835_s16 }
  0x17   : > { %s3313_s11 = scalar_lea.vmem %s3808_s1, %s3009_s5  ;;  %272 = sbr.rel (%p2274_p10) target bundleno = 34 (0x22), region = 40 }
  0x18   : > { %s265_s14 = sadd.s32 %s3011_s12, %s3010_s13 }
  0x19   : > { %s2273_s25 = sshll.u32 %s265_s14, 2 }
  0x1a   : > { %s3319_s27 = scalar_lea.vmem %s3811_s4, %s2273_s25 }
  0x1c   : > { %v3226_v0 = vmov 0.0  }
  0x1d   : > { %273 = vst [vmem:[#allocation2 + $0x30] sm:$0xff] %v3226_v0  ;;  %274 = vst [vmem:[#allocation2] sm:$0xff] %v3226_v0 }
  0x1e   : > { %275 = vst [vmem:[#allocation2 + $0x18] sm:$0xff] %v3226_v0  ;;  %276 = vst [vmem:[#allocation2 + $0x10] sm:$0xff] %v3226_v0 }
  0x1f   : > { %277 = vst [vmem:[#allocation2 + $0x48] sm:$0xff] %v3226_v0  ;;  %278 = vst [vmem:[#allocation2 + $0x28] sm:$0xff] %v3226_v0 }
  0x20   : > { %279 = vst [vmem:[#allocation2 + $0x8] sm:$0xff] %v3226_v0  ;;  %280 = vst [vmem:[#allocation2 + $0x20] sm:$0xff] %v3226_v0 }
  0x21   : > { %281 = vst [vmem:[#allocation2 + $0x40] sm:$0xff] %v3226_v0  ;;  %282 = vst [vmem:[#allocation2 + $0x38] sm:$0x3f] %v3226_v0 }
  0x22 PF: > { %v3071_v1 = vld [vmem:[%s3313_s11 + $0x38] sm:$0xff]   ;;  %v3227_v2 = vmov 0.0   ;;  %v3073_v4 = vld [vmem:[%s3313_s11 + $0x30] sm:$0xff]   ;;  %vm3228_vm0 = vmmov 0   ;;  %v3075_v6 = vld [vmem:[%s3313_s11 + $0x28] sm:$0xff]   ;;  %vm698_vm2 = vcmask 1046528  }
  0x23   : > { %2667 = vmatprep.subr.bf16.mxu0 %v3227_v2  ;;  %2703 = vmatprep.subr.bf16.mxu1 %v3227_v2  ;;  %v3072_v3 = vld [vmem:[%s3313_s11 + $0x78] sm:$0xff]   ;;  %v3074_v5 = vld [vmem:[%s3313_s11 + $0x70] sm:$0xff]   ;;  %v3076_v7 = vld [vmem:[%s3313_s11 + $0x68] sm:$0xff]   ;;  %vm501_vm1 = vsmask.f32 7424  ;;  %vm1304_vm4 = vcmask 1045504  }
  0x24   : > { %2668 = vmatpush3.bf16.msra.mxu0 %v3071_v1  ;;  %2683 = vmatprep.mubr.msk.bf16.mxu0 %vm3228_vm0, %v3227_v2  ;;  %v3077_v8 = vld [vmem:[%s3313_s11 + $0x20] sm:$0xff]   ;;  %v3079_v10 = vld [vmem:[%s3313_s11 + $0x18] sm:$0xff]   ;;  %v3081_v15 = vld [vmem:[%s3313_s11 + $0x10] sm:$0xff]   ;;  %vm1097_vm3 = vsmask.f32 6400  ;;  %vm1887_vm6 = vcmask 1044480  }
  0x25   : > { %2704 = vmatpush3.bf16.msra.mxu1 %v3072_v3  ;;  %2669 = vmatprep.subr.bf16.mxu0 %v3227_v2  ;;  %v3078_v9 = vld [vmem:[%s3313_s11 + $0x60] sm:$0xff]   ;;  %v3080_v11 = vld [vmem:[%s3313_s11 + $0x58] sm:$0xff]   ;;  %v3082_v16 = vld [vmem:[%s3313_s11 + $0x50] sm:$0xff]   ;;  %vm1676_vm5 = vsmask.f32 5376  ;;  %p2502_p11 = scmp.ne.s32.totalorder %s3200_s15, 2 }
  0x26   : > { %2705 = vmatprep.subr.bf16.mxu1 %v3227_v2  ;;  %2719 = vmatprep.mubr.msk.bf16.mxu1 %vm3228_vm0, %v3227_v2  ;;  %v293_v12 = vld [vmem:[%s3308_s8] sm:$0xf]  ;;  %v3348_v13 = vld [vmem:[%s3308_s8 + $0x4] sm:$0xf]  ;;  %v3355_v18 = vld [vmem:[%s3308_s8 + $0x8] sm:$0xff]  }
  0x27   : > { %v2275_v14 = vcombine.low %v293_v12, %v3348_v13  ;;  %v3083_v19 = vld [vmem:[%s3313_s11 + $0x8] sm:$0xff]   ;;  %v510_v23 = vshll.u32 %v3355_v18, 16  ;;  %v3085_v24 = vld [vmem:[%s3313_s11] sm:$0xff]   ;;  %v3367_v28 = vld [vmem:[%s3308_s8 + $0x10] sm:$0xff]   ;;  %v514_v31 = vshrl.u32 %v3355_v18, 16 }
  0x28   : > { %2670 = vmatpush3.bf16.msra.mxu0 %v3073_v4  ;;  %v3084_v20 = vld [vmem:[%s3313_s11 + $0x48] sm:$0xff]   ;;  %v3086_v25 = vld [vmem:[%s3313_s11 + $0x40] sm:$0xff]   ;;  %v3090_v29 = vld [vmem:[%s3313_s11 + $0xb8] sm:$0xff]   ;;  %v518_v32 = vshll.u32 %v3367_v28, 16  ;;  %v522_v40 = vshrl.u32 %v3367_v28, 16 }
  0x29   : > { %2706 = vmatpush3.bf16.msra.mxu1 %v3074_v5  ;;  %2671 = vmatprep.subr.bf16.mxu0 %v3227_v2  ;;  %v505_v17 = vshll.u32 %v2275_v14, 16  ;;  %v503_v21 = vshrl.u32 %v2275_v14, 16  ;;  %v512_v27 = vrot.slane %v510_v23, 1  ;;  %v3093_v33 = vld [vmem:[%s3313_s11 + $0xf8] sm:$0xff]   ;;  %v3091_v34 = vld [vmem:[%s3313_s11 + $0xb0] sm:$0xff]   ;;  %v3094_v39 = vld [vmem:[%s3313_s11 + $0xa8] sm:$0xff]  }
  0x2a   : > { %2707 = vmatprep.subr.bf16.mxu1 %v3227_v2  ;;  %v520_v36 = vrot.slane %v518_v32, 1  ;;  %v3382_v37 = vld [vmem:[%s3308_s8 + $0x18] sm:$0xff]   ;;  %v3095_v38 = vld [vmem:[%s3313_s11 + $0xf0] sm:$0xff]   ;;  %v3098_v43 = vld [vmem:[%s3313_s11 + $0xe8] sm:$0xff]  }
  0x2b   : > { %v507_v22 = vrot.slane %v505_v17, 1  ;;  %v516_v35 = vor.u32 %v514_v31, %v512_v27  ;;  %v526_v42 = vshll.u32 %v3382_v37, 16  ;;  %v3395_v44 = vld [vmem:[%s3308_s8 + $0x20] sm:$0xf]  ;;  %v480_v45 = vld [vmem:[%s3308_s8 + $0x24] sm:$0xf] }
  0x2c   : > { %2672 = vmatpush3.bf16.msra.mxu0 %v3075_v6  ;;  %v3097_v46 = vld [vmem:[%s3313_s11 + $0xa0] sm:$0xff]   ;;  %v524_v47 = vor.u32 %v522_v40, %v520_v36  ;;  %v3406_v49 = vcombine.low %v3395_v44, %v480_v45  ;;  %v3099_v51 = vld [vmem:[%s3313_s11 + $0x98] sm:$0xff]   ;;  %v530_v53 = vshrl.u32 %v3382_v37, 16  ;;  %v3103_v56 = vld [vmem:[%s3313_s11 + $0x90] sm:$0xff]  }
  0x2d   : > { %2708 = vmatpush3.bf16.msra.mxu1 %v3076_v7  ;;  %2673 = vmatprep.subr.bf16.mxu0 %v3227_v2  ;;  %v508_v26 = vor.u32 %v507_v22, %v503_v21  ;;  %v521_v41 = vsel %vm501_vm1, %v516_v35, %v520_v36  ;;  %v528_v48 = vrot.slane %v526_v42, 1  ;;  %v3100_v50 = vld [vmem:[%s3313_s11 + $0xe0] sm:$0xff]   ;;  %v3102_v55 = vld [vmem:[%s3313_s11 + $0xd8] sm:$0xff]   ;;  %v3104_v59 = vld [vmem:[%s3313_s11 + $0xd0] sm:$0xff]  }
  0x2e   : > { %2709 = vmatprep.subr.bf16.mxu1 %v3227_v2  ;;  %v534_v54 = vshll.u32 %v3406_v49, 16  ;;  %v3105_v61 = vld [vmem:[%s3313_s11 + $0x88] sm:$0xff]   ;;  %v302_v63 = vld [vmem:[%s3308_s8 + $0x24] sm:$0x7]  ;;  %v538_v0 = vshrl.u32 %v3406_v49, 16  ;;  %v3117_v22 = vld [vmem:[%s3313_s11 + $0x170] sm:$0xff]  }
  0x2f   : > { %v513_v30 = vsel %vm501_vm1, %v508_v26, %v512_v27  ;;  %v529_v52 = vsel %vm501_vm1, %v524_v47, %v528_v48  ;;  %v532_v57 = vor.u32 %v530_v53, %v528_v48  ;;  %v3107_v62 = vld [vmem:[%s3313_s11 + $0xc8] sm:$0xff]   ;;  %v677_v1 = vld [vmem:[%s3308_s8] sm:$0xe]  ;;  %v2279_v5 = vcombine.low %v3395_v44, %v302_v63  ;;  %v1041_v40 = vld [vmem:[%s3308_s8 + $0x4] sm:$0xe] }
  0x30   : > { %2674 = vmatpush3.bf16.msra.mxu0 %v3077_v8  ;;  %v536_v58 = vrot.slane %v534_v54, 1  ;;  %v3108_v3 = vld [vmem:[%s3313_s11 + $0x80] sm:$0xff]   ;;  %v2329_v6 = vcombine.low %v677_v1, %v3348_v13  ;;  %v3120_v27 = vld [vmem:[%s3313_s11 + $0x168] sm:$0xff]   ;;  %v706_v36 = vrot.slane %v3406_v49, 1  ;;  %v3126_v42 = vld [vmem:[%s3313_s11 + $0x150] sm:$0xff]  }
  0x31   : > { %2710 = vmatpush3.bf16.msra.mxu1 %v3078_v9  ;;  %2675 = vmatprep.subr.bf16.mxu0 %v3227_v2  ;;  %v3109_v4 = vld [vmem:[%s3313_s11 + $0xc0] sm:$0xff]   ;;  %v3111_v9 = vld [vmem:[%s3308_s8 + $0xc] sm:$0xff]  }
  0x32   : > { %2711 = vmatprep.subr.bf16.mxu1 %v3227_v2  ;;  %v537_v60 = vsel %vm501_vm1, %v532_v57, %v536_v58  ;;  %v540_v7 = vor.u32 %v538_v0, %v536_v58  ;;  %v3110_v8 = vld [vmem:[%s3308_s8 + $0x4] sm:$0xfe]   ;;  %v897_v13 = vrot.slane %v3111_v9, 1  ;;  %v3118_v26 = vld [vmem:[%s3308_s8 + $0x1c] sm:$0xff]   ;;  %v3505_v45 = vld [vmem:[%s3308_s8 + $0xc] sm:$0xff]  }
  0x33   : > { %v896_v12 = vrot.slane %v3110_v8, 1  ;;  %v3122_v31 = vld [vmem:[%s3313_s11 + $0x160] sm:$0xff]   ;;  %v3127_v47 = vld [vmem:[%s3313_s11 + $0x108] sm:$0xff]  }
  0x34   : > { %2676 = vmatpush3.bf16.msra.mxu0 %v3079_v10  ;;  %v699_v10 = vrot.slane %v2329_v6, 1  ;;  %v3123_v32 = vld [vmem:[%s3308_s8 + $0x24] sm:$0xff]   ;;  %v3134_v6 = vld [vmem:[%s3313_s11 + $0x1b8] sm:$0xff]  }
  0x35   : > { %2712 = vmatpush3.bf16.msra.mxu1 %v3080_v11  ;;  %2677 = vmatprep.subr.bf16.mxu0 %v3227_v2  ;;  %v700_v11 = vrot.slane %v3355_v18, 1  ;;  %v898_v17 = vsel %vm698_vm2, %v896_v12, %v897_v13  ;;  %v3128_v48 = vld [vmem:[%s3313_s11 + $0x148] sm:$0xff]   ;;  %v3129_v53 = vld [vmem:[%s3313_s11 + $0x100] sm:$0xff]   ;;  %v3135_v12 = vld [vmem:[%s3313_s11 + $0x1b0] sm:$0xff]  }
  0x36   : > { %2713 = vmatprep.subr.bf16.mxu1 %v3227_v2  ;;  %v3130_v54 = vld [vmem:[%s3313_s11 + $0x140] sm:$0xff]  }
  0x37   : > { %v3538_v9 = vld [vmem:[%s3308_s8 + $0x1c] sm:$0xff]  }
  0x38   : > { %2678 = vmatpush3.bf16.msra.mxu0 %v3081_v15  ;;  %v701_v15 = vsel %vm698_vm2, %v699_v10, %v700_v11 }
  0x39   : > { %2714 = vmatpush3.bf16.msra.mxu1 %v3082_v16  ;;  %2679 = vmatprep.subr.bf16.mxu0 %v3227_v2  ;;  %v3114_v16 = vld [vmem:[%s3308_s8 + $0x14] sm:$0xff]  }
  0x3a   : > { %2715 = vmatprep.subr.bf16.mxu1 %v3227_v2  ;;  %v899_v21 = vrot.slane %v3114_v16, 1 }
  0x3c   : > { %2680 = vmatpush3.bf16.msra.mxu0 %v3083_v19  ;;  %v3115_v19 = vld [vmem:[%s3313_s11 + $0x178] sm:$0xff]  }
  0x3d   : > { %2716 = vmatpush3.bf16.msra.mxu1 %v3084_v20  ;;  %2681 = vmatprep.subr.bf16.mxu0 %v3227_v2  ;;  %v3113_v20 = vld [vmem:[%s3313_s11 + $0x130] sm:$0xff]  }
  0x3e   : > { %2717 = vmatprep.subr.bf16.mxu1 %v3227_v2 }
  0x40   : > { %2682 = vmatpush3.bf16.msra.mxu0 %v3085_v24  ;;  %v3116_v24 = vld [vmem:[%s3313_s11 + $0x128] sm:$0xff]  }
  0x41   : > { %2718 = vmatpush3.bf16.msra.mxu1 %v3086_v25  ;;  %2739 = vmatprep.subr.bf16.mxu0 %v3227_v2  ;;  %v900_v25 = vsel %vm698_vm2, %v897_v13, %v899_v21 }
  0x42   : > { %2775 = vmatprep.subr.bf16.mxu1 %v3227_v2 }
  0x43   : > { %2684 = vmatmul.mubr.bf16.vlgmr.msra.gmra.mxu0 %v2275_v14  ;;  %v3112_v14 = vld [vmem:[%s3313_s11 + $0x138] sm:$0xff]  }
  0x44   : > { %2720 = vmatmul.mubr.bf16.vlgmr.msra.gmra.mxu1 %v513_v30  ;;  %2740 = vmatpush3.bf16.msra.mxu0 %v3090_v29  ;;  %v3119_v29 = vld [vmem:[%s3313_s11 + $0x120] sm:$0xff]   ;;  %v901_v30 = vrot.slane %v3118_v26, 1 }
  0x45   : > { %2741 = vmatprep.subr.bf16.mxu0 %v3227_v2  ;;  %2687 = vmatprep.mubr.msk.bf16.mxu0 %vm3228_vm0, %v3227_v2  ;;  %v3141_v26 = vld [vmem:[%s3313_s11 + $0x1a0] sm:$0xff]  }
  0x46   : > { %2723 = vmatprep.mubr.msk.bf16.mxu1 %vm3228_vm0, %v3227_v2  ;;  %2776 = vmatpush3.bf16.msra.mxu1 %v3093_v33  ;;  %v902_v35 = vsel %vm698_vm2, %v899_v21, %v901_v30 }
  0x47   : > { %2777 = vmatprep.subr.bf16.mxu1 %v3227_v2 }
  0x48   : > { %2742 = vmatpush3.bf16.msra.mxu0 %v3091_v34  ;;  %v3121_v34 = vld [vmem:[%s3313_s11 + $0x118] sm:$0xff]  }
  0x49   : > { %2743 = vmatprep.subr.bf16.mxu0 %v3227_v2 }
  0x4a   : > { %2778 = vmatpush3.bf16.msra.mxu1 %v3095_v38  ;;  %v903_v38 = vrot.slane %v3123_v32, 1  ;;  %v3143_v32 = vld [vmem:[%s3313_s11 + $0x198] sm:$0xff]  }
  0x4b   : > { %2688 = vmatmul.mubr.bf16.gmra.mxu0 %v3355_v18  ;;  %2779 = vmatprep.subr.bf16.mxu1 %v3227_v2  ;;  %v702_v18 = vrot.slane %v3367_v28, 1 }
  0x4c   : > { %2724 = vmatmul.mubr.bf16.gmra.mxu1 %v521_v41  ;;  %2744 = vmatpush3.bf16.msra.mxu0 %v3094_v39  ;;  %v3125_v39 = vld [vmem:[%s3313_s11 + $0x110] sm:$0xff]   ;;  %v1042_v41 = vld [vmem:[%s3308_s8 + $0x8] sm:$0xf] }
  0x4d   : > { %2691 = vmatprep.mubr.msk.bf16.mxu0 %vm3228_vm0, %v3227_v2  ;;  %2727 = vmatprep.mubr.msk.bf16.mxu1 %vm3228_vm0, %v3227_v2  ;;  %v703_v23 = vsel %vm698_vm2, %v700_v11, %v702_v18  ;;  %v3137_v11 = vld [vmem:[%s3313_s11 + $0x1f8] sm:$0xff]  }
  0x4e   : > { %2745 = vmatprep.subr.bf16.mxu0 %v3227_v2  ;;  %2780 = vmatpush3.bf16.msra.mxu1 %v3098_v43  ;;  %v2383_v43 = vcombine.low %v1041_v40, %v1042_v41 }
  0x4f   : > { %2781 = vmatprep.subr.bf16.mxu1 %v3227_v2 }
  0x50   : > { %2746 = vmatpush3.bf16.msra.mxu0 %v3097_v46  ;;  %v904_v46 = vsel %vm698_vm2, %v901_v30, %v903_v38  ;;  %v1099_v49 = vshrl.u32 %v2383_v43, 16  ;;  %v3144_v30 = vld [vmem:[%s3313_s11 + $0x1e0] sm:$0xff]  }
  0x51   : > { %2747 = vmatprep.subr.bf16.mxu0 %v3227_v2 }
  0x52   : > { %2782 = vmatpush3.bf16.msra.mxu1 %v3100_v50  ;;  %v1102_v50 = vshll.u32 %v2383_v43, 16  ;;  %v3590_v43 = vld [vmem:[%s3308_s8 + $0xc] sm:$0xf] }
  0x53   : > { %2692 = vmatmul.mubr.bf16.gmra.mxu0 %v3367_v28  ;;  %2783 = vmatprep.subr.bf16.mxu1 %v3227_v2  ;;  %v704_v28 = vrot.slane %v3382_v37, 1 }
  0x54   : > { %2728 = vmatmul.mubr.bf16.gmra.mxu1 %v529_v52  ;;  %2748 = vmatpush3.bf16.msra.mxu0 %v3099_v51  ;;  %v1107_v51 = vshrl.u32 %v3505_v45, 16  ;;  %v1110_v52 = vshll.u32 %v3505_v45, 16  ;;  %v1104_v57 = vrot.slane %v1102_v50, 2  ;;  %v3151_v50 = vld [vmem:[%s3313_s11 + $0x1c8] sm:$0xff]  }
  0x55   : > { %2695 = vmatprep.mubr.msk.bf16.mxu0 %vm3228_vm0, %v3227_v2  ;;  %2731 = vmatprep.mubr.msk.bf16.mxu1 %vm3228_vm0, %v3227_v2  ;;  %v705_v33 = vsel %vm698_vm2, %v702_v18, %v704_v28  ;;  %v707_v44 = vsel %vm698_vm2, %v704_v28, %v706_v36 }
  0x56   : > { %2749 = vmatprep.subr.bf16.mxu0 %v3227_v2  ;;  %2784 = vmatpush3.bf16.msra.mxu1 %v3102_v55  ;;  %v1283_v55 = vld [vmem:[%s3308_s8 + $0x4] sm:$0xc]  ;;  %v1109_v58 = vrot.slane %v1107_v51, 1 }
  0x57   : > { %2785 = vmatprep.subr.bf16.mxu1 %v3227_v2 }
  0x58   : > { %2750 = vmatpush3.bf16.msra.mxu0 %v3103_v56  ;;  %v1101_v56 = vrot.slane %v1099_v49, 1  ;;  %v3599_v49 = vld [vmem:[%s3308_s8 + $0x10] sm:$0xff]  }
  0x59   : > { %2751 = vmatprep.subr.bf16.mxu0 %v3227_v2 }
  0x5a   : > { %2786 = vmatpush3.bf16.msra.mxu1 %v3104_v59  ;;  %v1112_v59 = vrot.slane %v1110_v52, 2 }
  0x5b   : > { %2696 = vmatmul.mubr.bf16.gmra.mxu0 %v3382_v37  ;;  %2787 = vmatprep.subr.bf16.mxu1 %v3227_v2  ;;  %v3124_v37 = vld [vmem:[%s3313_s11 + $0x158] sm:$0xff]  }
  0x5c   : > { %2732 = vmatmul.mubr.bf16.gmra.mxu1 %v537_v60  ;;  %2699 = vmatprep.mubr.msk.bf16.mxu0 %vm3228_vm0, %v3227_v2  ;;  %v3524_v60 = vld [vmem:[%s3308_s8 + $0x14] sm:$0xff]   ;;  %v1113_v63 = vor.u32 %v1112_v59, %v1109_v58  ;;  %v3153_v58 = vld [vmem:[%s3313_s11 + $0x1c0] sm:$0xff]  }
  0x5d   : > { %2735 = vmatprep.mubr.msk.bf16.mxu1 %vm3228_vm0, %v3227_v2  ;;  %2752 = vmatpush3.bf16.msra.mxu0 %v3105_v61  ;;  %v2413_v61 = vcombine.low %v1283_v55, %v1042_v41  ;;  %v1116_v0 = vshrl.u32 %v3524_v60, 16  ;;  %v1119_v1 = vshll.u32 %v3524_v60, 16  ;;  %v1308_v16 = vrot.slane %v3524_v60, 2  ;;  %v3148_v41 = vld [vmem:[%s3313_s11 + $0x1d0] sm:$0xff]  }
  0x5e   : > { %2788 = vmatpush3.bf16.msra.mxu1 %v3107_v62  ;;  %2753 = vmatprep.subr.bf16.mxu0 %v3227_v2  ;;  %v1105_v62 = vor.u32 %v1104_v57, %v1101_v56  ;;  %v1686_v56 = vshrl.u32 %v3599_v49, 16  ;;  %v1689_v57 = vshll.u32 %v3599_v49, 16 }
  0x5f   : > { %2789 = vmatprep.subr.bf16.mxu1 %v3227_v2  ;;  %v1121_v8 = vrot.slane %v1119_v1, 2  ;;  %v3616_v1 = vld [vmem:[%s3308_s8 + $0x18] sm:$0xff]  }
  0x61   : > { %2754 = vmatpush3.bf16.msra.mxu0 %v3108_v3  ;;  %v1305_v3 = vrot.slane %v2413_v61, 2 }
  0x62   : > { %2790 = vmatpush3.bf16.msra.mxu1 %v3109_v4  ;;  %2811 = vmatprep.subr.bf16.mxu0 %v3227_v2  ;;  %v1306_v4 = vrot.slane %v3505_v45, 2 }
  0x63   : > { %2700 = vmatmul.mubr.bf16.gmra.mxu0 %v2279_v5  ;;  %2847 = vmatprep.subr.bf16.mxu1 %v3227_v2  ;;  %v1114_v5 = vsel %vm1097_vm3, %v1105_v62, %v1113_v63 }
  0x64   : > { %2736 = vmatmul.mubr.bf16.gmra.mxu1 %v540_v7  ;;  %2755 = vmatprep.mubr.msk.bf16.mxu0 %vm3228_vm0, %v3227_v2  ;;  %v1118_v7 = vrot.slane %v1116_v0, 1  ;;  %v1307_v10 = vsel %vm1304_vm4, %v1305_v3, %v1306_v4  ;;  %v1691_v0 = vrot.slane %v1689_v57, 3 }
  0x65   : > { %2791 = vmatprep.mubr.msk.bf16.mxu1 %vm3228_vm0, %v3227_v2 }
  0x66   : > { %v1122_v13 = vor.u32 %v1121_v8, %v1118_v7  ;;  %v1695_v7 = vshrl.u32 %v3616_v1, 16  ;;  %v1698_v8 = vshll.u32 %v3616_v1, 16 }
  0x6b   : > { %2756 = vmatmul.mubr.bf16.vlgmr.msra.gmra.mxu0 %v701_v15  ;;  %v1128_v15 = vshll.u32 %v3538_v9, 16 }
  0x6c   : > { %2792 = vmatmul.mubr.bf16.vlgmr.msra.gmra.mxu1 %v898_v17  ;;  %2812 = vmatpush3.bf16.msra.mxu0 %v3112_v14  ;;  %v1125_v14 = vshrl.u32 %v3538_v9, 16  ;;  %v3139_v17 = vld [vmem:[%s3313_s11 + $0x1f0] sm:$0xff]  }
  0x6d   : > { %2813 = vmatprep.subr.bf16.mxu0 %v3227_v2  ;;  %2759 = vmatprep.mubr.msk.bf16.mxu0 %vm3228_vm0, %v3227_v2  ;;  %v1130_v21 = vrot.slane %v1128_v15, 2  ;;  %v3157_v15 = vld [vmem:[%s3313_s11 + $0x230] sm:$0xff]  }
  0x6e   : > { %2795 = vmatprep.mubr.msk.bf16.mxu1 %vm3228_vm0, %v3227_v2  ;;  %2848 = vmatpush3.bf16.msra.mxu1 %v3115_v19  ;;  %v1123_v19 = vsel %vm1097_vm3, %v1113_v63, %v1122_v13  ;;  %v1127_v18 = vrot.slane %v1125_v14, 1  ;;  %v1688_v63 = vrot.slane %v1686_v56, 2  ;;  %v3631_v14 = vld [vmem:[%s3308_s8 + $0x20] sm:$0xff]  }
  0x6f   : > { %2849 = vmatprep.subr.bf16.mxu1 %v3227_v2 }
  0x70   : > { %2814 = vmatpush3.bf16.msra.mxu0 %v3113_v20  ;;  %v3138_v20 = vld [vmem:[%s3313_s11 + $0x1a8] sm:$0xff]  }
  0x71   : > { %2815 = vmatprep.subr.bf16.mxu0 %v3227_v2 }
  0x72   : > { %2850 = vmatpush3.bf16.msra.mxu1 %v3117_v22  ;;  %v3556_v22 = vld [vmem:[%s3308_s8 + $0x24] sm:$0xff]  }
  0x73   : > { %2760 = vmatmul.mubr.bf16.gmra.mxu0 %v703_v23  ;;  %2851 = vmatprep.subr.bf16.mxu1 %v3227_v2  ;;  %v1309_v23 = vsel %vm1304_vm4, %v1306_v4, %v1308_v16  ;;  %v1137_v28 = vshll.u32 %v3556_v22, 16  ;;  %v1312_v40 = vrot.slane %v3556_v22, 2  ;;  %v1509_v4 = vrot.slane %v3599_v49, 2 }
  0x74   : > { %2796 = vmatmul.mubr.bf16.gmra.mxu1 %v900_v25  ;;  %2816 = vmatpush3.bf16.msra.mxu0 %v3116_v24  ;;  %v3142_v24 = vld [vmem:[%s3313_s11 + $0x1e8] sm:$0xff]   ;;  %v1131_v25 = vor.u32 %v1130_v21, %v1127_v18 }
  0x75   : > { %2763 = vmatprep.mubr.msk.bf16.mxu0 %vm3228_vm0, %v3227_v2  ;;  %2799 = vmatprep.mubr.msk.bf16.mxu1 %vm3228_vm0, %v3227_v2  ;;  %v3159_v21 = vld [vmem:[%s3313_s11 + $0x228] sm:$0xff]  }
  0x76   : > { %2817 = vmatprep.subr.bf16.mxu0 %v3227_v2  ;;  %2852 = vmatpush3.bf16.msra.mxu1 %v3120_v27  ;;  %v1134_v27 = vshrl.u32 %v3556_v22, 16 }
  0x77   : > { %2853 = vmatprep.subr.bf16.mxu1 %v3227_v2 }
  0x78   : > { %2818 = vmatpush3.bf16.msra.mxu0 %v3119_v29  ;;  %v1310_v29 = vrot.slane %v3538_v9, 2 }
  0x79   : > { %2819 = vmatprep.subr.bf16.mxu0 %v3227_v2 }
  0x7a   : > { %2854 = vmatpush3.bf16.msra.mxu1 %v3122_v31  ;;  %v1132_v31 = vsel %vm1097_vm3, %v1122_v13, %v1131_v25  ;;  %v1700_v13 = vrot.slane %v1698_v8, 3  ;;  %v284_v8 = vld [vmem:[#allocation2] sm:$0xff] }
  0x7b   : > { %2764 = vmatmul.mubr.bf16.gmra.mxu0 %v705_v33  ;;  %2855 = vmatprep.subr.bf16.mxu1 %v3227_v2  ;;  %v1136_v33 = vrot.slane %v1134_v27, 1  ;;  %v3161_v27 = vld [vmem:[%s3313_s11 + $0x220] sm:$0xff]  }
  0x7c   : > { %2800 = vmatmul.mubr.bf16.gmra.mxu1 %v902_v35  ;;  %2820 = vmatpush3.bf16.msra.mxu0 %v3121_v34  ;;  %v1139_v34 = vrot.slane %v1137_v28, 2  ;;  %v1311_v35 = vsel %vm1304_vm4, %v1308_v16, %v1310_v29  ;;  %v1511_v16 = vrot.slane %v3616_v1, 2 }
  0x7d   : > { %2767 = vmatprep.mubr.msk.bf16.mxu0 %vm3228_vm0, %v3227_v2  ;;  %2803 = vmatprep.mubr.msk.bf16.mxu1 %vm3228_vm0, %v3227_v2 }
  0x7e   : > { %2821 = vmatprep.subr.bf16.mxu0 %v3227_v2  ;;  %2856 = vmatpush3.bf16.msra.mxu1 %v3124_v37  ;;  %v1140_v37 = vor.u32 %v1139_v34, %v1136_v33  ;;  %v1512_v18 = vsel %vm1304_vm4, %v1509_v4, %v1511_v16 }
  0x7f   : > { %2857 = vmatprep.subr.bf16.mxu1 %v3227_v2 }
  0x80   : > { %2822 = vmatpush3.bf16.msra.mxu0 %v3125_v39  ;;  %v3150_v39 = vld [vmem:[%s3308_s8 + $0x2c] ss:$0 sps:$4 sm:$0x11]  }
  0x81   : > { %2823 = vmatprep.subr.bf16.mxu0 %v3227_v2  ;;  %v1143_v45 = vshll.u32 %v3150_v39, 16  ;;  %v1314_v52 = vrot.slane %v3150_v39, 2 }
  0x82   : > { %2858 = vmatpush3.bf16.msra.mxu1 %v3126_v42  ;;  %v1452_v42 = vld [vmem:[%s3308_s8 + $0x8] sm:$0xc] }
  0x83   : > { %2768 = vmatmul.mubr.bf16.gmra.mxu0 %v707_v44  ;;  %2859 = vmatprep.subr.bf16.mxu1 %v3227_v2  ;;  %v1141_v44 = vsel %vm1097_vm3, %v1131_v25, %v1140_v37  ;;  %v1145_v51 = vrot.slane %v1143_v45, 2  ;;  %v1315_v60 = vsel %vm1304_vm4, %v1312_v40, %v1314_v52  ;;  %v3648_v25 = vld [vmem:[%s3308_s8 + $0x28] sm:$0xff]   ;;  %v3168_v52 = vld [vmem:[%s3313_s11 + $0x200] sm:$0xff]  }
  0x84   : > { %2804 = vmatmul.mubr.bf16.gmra.mxu1 %v904_v46  ;;  %2771 = vmatprep.mubr.msk.bf16.mxu0 %vm3228_vm0, %v3227_v2  ;;  %v1313_v46 = vsel %vm1304_vm4, %v1310_v29, %v1312_v40  ;;  %v1713_v29 = vshrl.u32 %v3648_v25, 16 }
  0x85   : > { %2807 = vmatprep.mubr.msk.bf16.mxu1 %vm3228_vm0, %v3227_v2  ;;  %2824 = vmatpush3.bf16.msra.mxu0 %v3127_v47  ;;  %v3149_v47 = vld [vmem:[%s3313_s11 + $0x188] sm:$0xff]   ;;  %v1146_v59 = vsel %vm1097_vm3, %v1140_v37, %v1145_v51  ;;  %v1515_v37 = vrot.slane %v3648_v25, 2 }
  0x86   : > { %2860 = vmatpush3.bf16.msra.mxu1 %v3128_v48  ;;  %2825 = vmatprep.subr.bf16.mxu0 %v3227_v2  ;;  %v2438_v48 = vcombine.low %v1452_v42, %v3590_v43  ;;  %v1715_v34 = vrot.slane %v1713_v29, 2 }
  0x87   : > { %2861 = vmatprep.subr.bf16.mxu1 %v3227_v2 }
  0x88   : > { %v1681_v55 = vshll.u32 %v2438_v48, 16  ;;  %v1508_v3 = vrot.slane %v2438_v48, 2 }
  0x89   : > { %2826 = vmatpush3.bf16.msra.mxu0 %v3129_v53  ;;  %v3152_v53 = vld [vmem:[%s3313_s11 + $0x180] sm:$0xff]  }
  0x8a   : > { %2862 = vmatpush3.bf16.msra.mxu1 %v3130_v54  ;;  %2883 = vmatprep.subr.bf16.mxu0 %v3227_v2  ;;  %v1678_v54 = vshrl.u32 %v2438_v48, 16  ;;  %v1683_v62 = vrot.slane %v1681_v55, 3  ;;  %v1510_v9 = vsel %vm1304_vm4, %v1508_v3, %v1509_v4  ;;  %v283_v4 = vld [vmem:[#allocation2 + $0x30] sm:$0xff] }
  0x8b   : > { %2772 = vmatmul.mubr.bf16.gmra.mxu0 %v706_v36  ;;  %2919 = vmatprep.subr.bf16.mxu1 %v3227_v2  ;;  %v3146_v36 = vld [vmem:[%s3313_s11 + $0x1d8] sm:$0xff]  }
  0x8c   : > { %2808 = vmatmul.mubr.bf16.gmra.mxu1 %v903_v38  ;;  %2827 = vmatprep.mubr.msk.bf16.mxu0 %vm3228_vm0, %v3227_v2  ;;  %v3147_v38 = vld [vmem:[%s3313_s11 + $0x190] sm:$0xff]   ;;  %v1680_v61 = vrot.slane %v1678_v54, 2 }
  0x8d   : > { %2863 = vmatprep.mubr.msk.bf16.mxu1 %vm3228_vm0, %v3227_v2 }
  0x93   : > { %2828 = vmatmul.mubr.bf16.vlgmr.msra.gmra.mxu0 %v1114_v5  ;;  %v1684_v5 = vor.u32 %v1683_v62, %v1680_v61  ;;  %v1891_v62 = vrot.slane %v3616_v1, 3 }
  0x94   : > { %2864 = vmatmul.mubr.bf16.vlgmr.msra.gmra.mxu1 %v1307_v10  ;;  %2884 = vmatpush3.bf16.msra.mxu0 %v3134_v6  ;;  %v1692_v6 = vor.u32 %v1691_v0, %v1688_v63  ;;  %v3156_v10 = vld [vmem:[%s3313_s11 + $0x238] sm:$0xff]  }
  0x95   : > { %2885 = vmatprep.subr.bf16.mxu0 %v3227_v2  ;;  %2831 = vmatprep.mubr.msk.bf16.mxu0 %vm3228_vm0, %v3227_v2 }
  0x96   : > { %2867 = vmatprep.mubr.msk.bf16.mxu1 %vm3228_vm0, %v3227_v2  ;;  %2920 = vmatpush3.bf16.msra.mxu1 %v3137_v11  ;;  %v1693_v11 = vsel %vm1676_vm5, %v1684_v5, %v1692_v6 }
  0x97   : > { %2921 = vmatprep.subr.bf16.mxu1 %v3227_v2 }
  0x98   : > { %2886 = vmatpush3.bf16.msra.mxu0 %v3135_v12  ;;  %v1697_v12 = vrot.slane %v1695_v7, 2 }
  0x99   : > { %2887 = vmatprep.subr.bf16.mxu0 %v3227_v2 }
  0x9a   : > { %2922 = vmatpush3.bf16.msra.mxu1 %v3139_v17  ;;  %v1701_v17 = vor.u32 %v1700_v13, %v1697_v12 }
  0x9b   : > { %2832 = vmatmul.mubr.bf16.gmra.mxu0 %v1123_v19  ;;  %2923 = vmatprep.subr.bf16.mxu1 %v3227_v2  ;;  %v1704_v19 = vshrl.u32 %v3631_v14, 16 }
  0x9c   : > { %2868 = vmatmul.mubr.bf16.gmra.mxu1 %v1309_v23  ;;  %2888 = vmatpush3.bf16.msra.mxu0 %v3138_v20  ;;  %v1707_v20 = vshll.u32 %v3631_v14, 16  ;;  %v1702_v22 = vsel %vm1676_vm5, %v1692_v6, %v1701_v17 }
  0x9d   : > { %2835 = vmatprep.mubr.msk.bf16.mxu0 %vm3228_vm0, %v3227_v2  ;;  %2871 = vmatprep.mubr.msk.bf16.mxu1 %vm3228_vm0, %v3227_v2  ;;  %v1706_v23 = vrot.slane %v1704_v19, 2 }
  0x9e   : > { %2889 = vmatprep.subr.bf16.mxu0 %v3227_v2  ;;  %2924 = vmatpush3.bf16.msra.mxu1 %v3142_v24  ;;  %v1709_v24 = vrot.slane %v1707_v20, 3 }
  0x9f   : > { %2925 = vmatprep.subr.bf16.mxu1 %v3227_v2 }
  0xa0   : > { %2890 = vmatpush3.bf16.msra.mxu0 %v3141_v26  ;;  %v1513_v26 = vrot.slane %v3631_v14, 2  ;;  %v1710_v28 = vor.u32 %v1709_v24, %v1706_v23 }
  0xa1   : > { %2891 = vmatprep.subr.bf16.mxu0 %v3227_v2 }
  0xa2   : > { %2926 = vmatpush3.bf16.msra.mxu1 %v3144_v30  ;;  %v1716_v30 = vshll.u32 %v3648_v25, 16  ;;  %v1711_v33 = vsel %vm1676_vm5, %v1701_v17, %v1710_v28  ;;  %v1516_v42 = vsel %vm1304_vm4, %v1513_v26, %v1515_v37 }
  0xa3   : > { %2836 = vmatmul.mubr.bf16.gmra.mxu0 %v1132_v31  ;;  %2927 = vmatprep.subr.bf16.mxu1 %v3227_v2  ;;  %v1514_v31 = vsel %vm1304_vm4, %v1511_v16, %v1513_v26 }
  0xa4   : > { %2872 = vmatmul.mubr.bf16.gmra.mxu1 %v1311_v35  ;;  %2892 = vmatpush3.bf16.msra.mxu0 %v3143_v32  ;;  %v3162_v32 = vld [vmem:[%s3313_s11 + $0x218] sm:$0xff]   ;;  %v1718_v35 = vrot.slane %v1716_v30, 3 }
  0xa5   : > { %2839 = vmatprep.mubr.msk.bf16.mxu0 %vm3228_vm0, %v3227_v2  ;;  %2875 = vmatprep.mubr.msk.bf16.mxu1 %vm3228_vm0, %v3227_v2 }
  0xa6   : > { %2893 = vmatprep.subr.bf16.mxu0 %v3227_v2  ;;  %2928 = vmatpush3.bf16.msra.mxu1 %v3146_v36  ;;  %v3666_v36 = vld [vmem:[%s3308_s8 + $0x30] ss:$0 sps:$4 sm:$0x33]   ;;  %v1719_v39 = vor.u32 %v1718_v35, %v1715_v34  ;;  %v288_v35 = vld [vmem:[#allocation2 + $0x28] sm:$0xff] }
  0xa7   : > { %2929 = vmatprep.subr.bf16.mxu1 %v3227_v2  ;;  %v1722_v40 = vshrl.u32 %v3666_v36, 16 }
  0xa8   : > { %2894 = vmatpush3.bf16.msra.mxu0 %v3147_v38  ;;  %v3164_v38 = vld [vmem:[%s3313_s11 + $0x210] sm:$0xff]   ;;  %v1720_v45 = vsel %vm1676_vm5, %v1710_v28, %v1719_v39  ;;  %v287_v28 = vld [vmem:[#allocation2 + $0x48] sm:$0xff] }
  0xa9   : > { %2895 = vmatprep.subr.bf16.mxu0 %v3227_v2 }
  0xaa   : > { %2930 = vmatpush3.bf16.msra.mxu1 %v3148_v41  ;;  %v1725_v41 = vshll.u32 %v3666_v36, 16 }
  0xab   : > { %2840 = vmatmul.mubr.bf16.gmra.mxu0 %v1141_v44  ;;  %2931 = vmatprep.subr.bf16.mxu1 %v3227_v2  ;;  %v3166_v44 = vld [vmem:[%s3308_s8 + $0x30] ss:$0 sps:$4 sm:$0x11]  }
  0xac   : > { %2876 = vmatmul.mubr.bf16.gmra.mxu1 %v1313_v46  ;;  %2843 = vmatprep.mubr.msk.bf16.mxu0 %vm3228_vm0, %v3227_v2  ;;  %v3165_v46 = vld [vmem:[%s3313_s11 + $0x208] sm:$0xff]   ;;  %v1727_v48 = vrot.slane %v1725_v41, 3 }
  0xad   : > { %2879 = vmatprep.mubr.msk.bf16.mxu1 %vm3228_vm0, %v3227_v2  ;;  %2896 = vmatpush3.bf16.msra.mxu0 %v3149_v47  ;;  %v1724_v47 = vrot.slane %v1722_v40, 2 }
  0xae   : > { %2932 = vmatpush3.bf16.msra.mxu1 %v3151_v50  ;;  %2897 = vmatprep.subr.bf16.mxu0 %v3227_v2  ;;  %v1517_v50 = vrot.slane %v3166_v44, 2 }
  0xaf   : > { %2933 = vmatprep.subr.bf16.mxu1 %v3227_v2  ;;  %v1728_v51 = vor.u32 %v1727_v48, %v1724_v47 }
  0xb0   : > { %v1518_v54 = vsel %vm1304_vm4, %v1515_v37, %v1517_v50 }
  0xb1   : > { %2898 = vmatpush3.bf16.msra.mxu0 %v3152_v53  ;;  %v1866_v53 = vld [vmem:[%s3308_s8 + $0x8] sm:$0x8]  ;;  %v1729_v56 = vsel %vm1676_vm5, %v1719_v39, %v1728_v51  ;;  %v290_v51 = vld [vmem:[#allocation2 + $0x20] sm:$0xff] }
  0xb2   : > { %2934 = vmatpush3.bf16.msra.mxu1 %v3153_v58  ;;  %2955 = vmatprep.subr.bf16.mxu0 %v3227_v2  ;;  %v2493_v55 = vcombine.low %v1866_v53, %v3590_v43  ;;  %v1889_v58 = vrot.slane %v3599_v49, 3  ;;  %v1895_v43 = vrot.slane %v3648_v25, 3  ;;  %v1897_v49 = vrot.slane %v3666_v36, 3 }
  0xb3   : > { %2844 = vmatmul.mubr.bf16.gmra.mxu0 %v1146_v59  ;;  %2991 = vmatprep.subr.bf16.mxu1 %v3227_v2  ;;  %v1893_v59 = vrot.slane %v3631_v14, 3 }
  0xb4   : > { %2880 = vmatmul.mubr.bf16.gmra.mxu1 %v1315_v60  ;;  %2899 = vmatprep.mubr.msk.bf16.mxu0 %vm3228_vm0, %v3227_v2  ;;  %v1888_v57 = vrot.slane %v2493_v55, 3  ;;  %v1892_v63 = vsel %vm1887_vm6, %v1889_v58, %v1891_v62  ;;  %v1898_v0 = vsel %vm1887_vm6, %v1895_v43, %v1897_v49 }
  0xb5   : > { %2935 = vmatprep.mubr.msk.bf16.mxu1 %vm3228_vm0, %v3227_v2  ;;  %v1896_v61 = vsel %vm1887_vm6, %v1893_v59, %v1895_v43  ;;  %v1894_v3 = vsel %vm1887_vm6, %v1891_v62, %v1893_v59 }
  0xb6   : > { %v1890_v60 = vsel %vm1887_vm6, %v1888_v57, %v1889_v58  ;;  %v291_v58 = vld [vmem:[#allocation2 + $0x40] sm:$0xff] }
  0xbb   : > { %2900 = vmatmul.mubr.bf16.vlgmr.msra.gmra.mxu0 %v1510_v9 }
  0xbc   : > { %2936 = vmatmul.mubr.bf16.vlgmr.msra.gmra.mxu1 %v1693_v11  ;;  %2956 = vmatpush3.bf16.msra.mxu0 %v3156_v10 }
  0xbd   : > { %2957 = vmatprep.subr.bf16.mxu0 %v3227_v2  ;;  %2903 = vmatprep.mubr.msk.bf16.mxu0 %vm3228_vm0, %v3227_v2 }
  0xbe   : > { %2939 = vmatprep.mubr.msk.bf16.mxu1 %vm3228_vm0, %v3227_v2  ;;  %2999 = vmatpush3.bf16.msra.mxu1 %v3156_v10 }
  0xbf   : > { %2992 = vmatprep.subr.bf16.mxu1 %v3227_v2 }
  0xc0   : > { %2958 = vmatpush3.bf16.msra.mxu0 %v3157_v15 }
  0xc1   : > { %2959 = vmatprep.subr.bf16.mxu0 %v3227_v2 }
  0xc2   : > { %3000 = vmatpush3.bf16.msra.mxu1 %v3157_v15  ;;  %v285_v15 = vld [vmem:[#allocation2 + $0x18] sm:$0xff] }
  0xc3   : > { %2904 = vmatmul.mubr.bf16.gmra.mxu0 %v1512_v18  ;;  %2993 = vmatprep.subr.bf16.mxu1 %v3227_v2 }
  0xc4   : > { %2940 = vmatmul.mubr.bf16.gmra.mxu1 %v1702_v22  ;;  %2960 = vmatpush3.bf16.msra.mxu0 %v3159_v21 }
  0xc5   : > { %2907 = vmatprep.mubr.msk.bf16.mxu0 %vm3228_vm0, %v3227_v2  ;;  %2943 = vmatprep.mubr.msk.bf16.mxu1 %vm3228_vm0, %v3227_v2 }
  0xc6   : > { %2961 = vmatprep.subr.bf16.mxu0 %v3227_v2  ;;  %3001 = vmatpush3.bf16.msra.mxu1 %v3159_v21  ;;  %v286_v21 = vld [vmem:[#allocation2 + $0x10] sm:$0xff] }
  0xc7   : > { %2994 = vmatprep.subr.bf16.mxu1 %v3227_v2 }
  0xc8   : > { %2962 = vmatpush3.bf16.msra.mxu0 %v3161_v27 }
  0xc9   : > { %2963 = vmatprep.subr.bf16.mxu0 %v3227_v2 }
  0xca   : > { %3002 = vmatpush3.bf16.msra.mxu1 %v3161_v27 }
  0xcb   : > { %2908 = vmatmul.mubr.bf16.gmra.mxu0 %v1514_v31  ;;  %2995 = vmatprep.subr.bf16.mxu1 %v3227_v2 }
  0xcc   : > { %2944 = vmatmul.mubr.bf16.gmra.mxu1 %v1711_v33  ;;  %2964 = vmatpush3.bf16.msra.mxu0 %v3162_v32 }
  0xcd   : > { %2911 = vmatprep.mubr.msk.bf16.mxu0 %vm3228_vm0, %v3227_v2  ;;  %2947 = vmatprep.mubr.msk.bf16.mxu1 %vm3228_vm0, %v3227_v2 }
  0xce   : > { %3003 = vmatpush3.bf16.msra.mxu1 %v3162_v32  ;;  %2965 = vmatprep.subr.bf16.mxu0 %v3227_v2 }
  0xcf   : > { %2996 = vmatprep.subr.bf16.mxu1 %v3227_v2 }
  0xd0   : > { %2966 = vmatpush3.bf16.msra.mxu0 %v3164_v38 }
  0xd1   : > { %2967 = vmatprep.subr.bf16.mxu0 %v3227_v2 }
  0xd2   : > { %3004 = vmatpush3.bf16.msra.mxu1 %v3164_v38 }
  0xd3   : > { %2912 = vmatmul.mubr.bf16.gmra.mxu0 %v1516_v42  ;;  %2997 = vmatprep.subr.bf16.mxu1 %v3227_v2  ;;  %v289_v42 = vld [vmem:[#allocation2 + $0x8] sm:$0xff] }
  0xd4   : > { %2948 = vmatmul.mubr.bf16.gmra.mxu1 %v1720_v45  ;;  %2915 = vmatprep.mubr.msk.bf16.mxu0 %vm3228_vm0, %v3227_v2 }
  0xd5   : > { %2951 = vmatprep.mubr.msk.bf16.mxu1 %vm3228_vm0, %v3227_v2  ;;  %2968 = vmatpush3.bf16.msra.mxu0 %v3165_v46 }
  0xd6   : > { %3005 = vmatpush3.bf16.msra.mxu1 %v3165_v46  ;;  %2969 = vmatprep.subr.bf16.mxu0 %v3227_v2 }
  0xd7   : > { %2998 = vmatprep.subr.bf16.mxu1 %v3227_v2 }
  0xd9   : > { %2970 = vmatpush3.bf16.msra.mxu0 %v3168_v52 }
  0xda   : > { %3006 = vmatpush3.bf16.msra.mxu1 %v3168_v52 }
  0xdb   : > { %2916 = vmatmul.mubr.bf16.gmra.mxu0 %v1518_v54 }
  0xdc   : > { %2952 = vmatmul.mubr.bf16.gmra.mxu1 %v1729_v56  ;;  %2971 = vmatprep.mubr.msk.bf16.mxu0 %vm3228_vm0, %v3227_v2 }
  0xdd   : > { %2983 = vmatprep.mubr.msk.bf16.mxu1 %vm3228_vm0, %v3227_v2 }
  0xe3   : > { %2972 = vmatmul.mubr.bf16.vlgmr.msra.gmra.mxu0 %v1890_v60 }
  0xe4   : > { %2984 = vmatmul.mubr.bf16.vlgmr.msra.gmra.mxu1 %v1896_v61  ;;  %2975 = vmatprep.mubr.msk.bf16.mxu0 %vm3228_vm0, %v3227_v2 }
  0xe5   : > { %2987 = vmatprep.mubr.msk.bf16.mxu1 %vm3228_vm0, %v3227_v2 }
  0xeb   : > { %2976 = vmatmul.mubr.bf16.gmra.mxu0 %v1892_v63  ;;  %v292_v63 = vld [vmem:[#allocation2 + $0x38] sm:$0x3f] }
  0xec   : > { %2988 = vmatmul.mubr.bf16.gmra.mxu1 %v1898_v0  ;;  %2979 = vmatprep.mubr.msk.bf16.mxu0 %vm3228_vm0, %v3227_v2 }
  0xf3   : > { %2980 = vmatmul.mubr.bf16.gmra.mxu0 %v1894_v3 }
 0x103   : > { %v431_v5 = vpop.f32.mrf.mxu0 }
 0x104   : > { %v470_v1 = vadd.f32 %v431_v5, %v283_v4  ;;  %v628_v6 = vpop.f32.mrf.mxu1 }
 0x105   : > { %v2685_v7 = vpop.f32.mrf.mxu0 }
 0x106   : > { %v3716_v9 = vadd.f32 %v628_v6, %v470_v1  ;;  %v2721_v10 = vpop.f32.mrf.mxu1 }
 0x107   : > { %v434_v11 = vpop.f32.mrf.mxu0 }
 0x108   : > { %v471_v12 = vadd.f32 %v434_v11, %v284_v8  ;;  %v631_v13 = vpop.f32.mrf.mxu1 }
 0x109   : > { %v2686_v14 = vpop.f32.mrf.mxu0 }
 0x10a   : > { %v3718_v16 = vadd.f32 %v631_v13, %v471_v12  ;;  %v2722_v2 = vpop.f32.mrf.mxu1 }
 0x10b   : > { %v439_v17 = vpop.f32.mrf.mxu0 }
 0x10c   : > { %v472_v19 = vadd.f32 %v439_v17, %v285_v15  ;;  %v636_v20 = vpop.f32.mrf.mxu1 }
 0x10d   : > { %v2689_v18 = vpop.f32.mrf.mxu0 }
 0x10e   : > { %v3720_v22 = vadd.f32 %v636_v20, %v472_v19  ;;  %v2725_v23 = vpop.f32.mrf.mxu1 }
 0x10f   : > { %v442_v24 = vpop.f32.mrf.mxu0 }
 0x110   : > { %v473_v25 = vadd.f32 %v442_v24, %v286_v21  ;;  %v639_v26 = vpop.f32.mrf.mxu1 }
 0x111   : > { %v2690_v27 = vpop.f32.mrf.mxu0 }
 0x112   : > { %v670_v29 = vadd.f32 %v639_v26, %v473_v25  ;;  %v2726_v30 = vpop.f32.mrf.mxu1 }
 0x113   : > { %v447_v31 = vpop.f32.mrf.mxu0 }
 0x114   : > { %v474_v32 = vadd.f32 %v447_v31, %v287_v28  ;;  %v644_v33 = vpop.f32.mrf.mxu1 }
 0x115   : > { %v2693_v34 = vpop.f32.mrf.mxu0 }
 0x116   : > { %v671_v36 = vadd.f32 %v644_v33, %v474_v32  ;;  %v2729_v37 = vpop.f32.mrf.mxu1 }
 0x117   : > { %v450_v38 = vpop.f32.mrf.mxu0 }
 0x118   : > { %v475_v39 = vadd.f32 %v450_v38, %v288_v35  ;;  %v647_v40 = vpop.f32.mrf.mxu1 }
 0x119   : > { %v2694_v41 = vpop.f32.mrf.mxu0 }
 0x11a   : > { %v672_v44 = vadd.f32 %v647_v40, %v475_v39  ;;  %v2730_v45 = vpop.f32.mrf.mxu1 }
 0x11b   : > { %v455_v46 = vpop.f32.mrf.mxu0 }
 0x11c   : > { %v476_v47 = vadd.f32 %v455_v46, %v289_v42  ;;  %v652_v48 = vpop.f32.mrf.mxu1 }
 0x11d   : > { %v2697_v50 = vpop.f32.mrf.mxu0 }
 0x11e   : > { %v673_v52 = vadd.f32 %v652_v48, %v476_v47  ;;  %v2733_v53 = vpop.f32.mrf.mxu1 }
 0x11f   : > { %v458_v54 = vpop.f32.mrf.mxu0 }
 0x120   : > { %v477_v55 = vadd.f32 %v458_v54, %v290_v51  ;;  %v655_v56 = vpop.f32.mrf.mxu1 }
 0x121   : > { %v2698_v57 = vpop.f32.mrf.mxu0 }
 0x122   : > { %v674_v59 = vadd.f32 %v655_v56, %v477_v55  ;;  %v2734_v43 = vpop.f32.mrf.mxu1 }
 0x123   : > { %v463_v60 = vpop.f32.mrf.mxu0 }
 0x124   : > { %v478_v61 = vadd.f32 %v463_v60, %v291_v58  ;;  %v660_v62 = vpop.f32.mrf.mxu1 }
 0x125   : > { %v2701_v49 = vpop.f32.mrf.mxu0 }
 0x126   : > { %v675_v0 = vadd.f32 %v660_v62, %v478_v61  ;;  %v2737_v3 = vpop.f32.mrf.mxu1 }
 0x127   : > { %v466_v4 = vpop.f32.mrf.mxu0 }
 0x128   : > { %v479_v5 = vadd.f32 %v466_v4, %v292_v63  ;;  %v663_v1 = vpop.f32.mrf.mxu1 }
 0x129   : > { %v2702_v6 = vpop.f32.mrf.mxu0 }
 0x12a   : > { %v676_v7 = vadd.f32 %v663_v1, %v479_v5  ;;  %v2738_v8 = vpop.f32.mrf.mxu1 }
 0x12b   : > { %v795_v10 = vpop.f32.mrf.mxu0 }
 0x12c   : > { %v834_v11 = vadd.f32 %v795_v10, %v3716_v9  ;;  %v992_v12 = vpop.f32.mrf.mxu1 }
 0x12d   : > { %v2757_v13 = vpop.f32.mrf.mxu0 }
 0x12e   : > { %v1031_v14 = vadd.f32 %v992_v12, %v834_v11  ;;  %v2793_v15 = vpop.f32.mrf.mxu1 }
 0x12f   : > { %v798_v2 = vpop.f32.mrf.mxu0 }
 0x130   : > { %v835_v17 = vadd.f32 %v798_v2, %v3718_v16  ;;  %v995_v19 = vpop.f32.mrf.mxu1 }
 0x131   : > { %v2758_v20 = vpop.f32.mrf.mxu0 }
 0x132   : > { %v1032_v18 = vadd.f32 %v995_v19, %v835_v17  ;;  %v2794_v21 = vpop.f32.mrf.mxu1 }
 0x133   : > { %v803_v23 = vpop.f32.mrf.mxu0 }
 0x134   : > { %v836_v24 = vadd.f32 %v803_v23, %v3720_v22  ;;  %v1000_v25 = vpop.f32.mrf.mxu1 }
 0x135   : > { %v2761_v26 = vpop.f32.mrf.mxu0 }
 0x136   : > { %v1033_v27 = vadd.f32 %v1000_v25, %v836_v24  ;;  %v2797_v28 = vpop.f32.mrf.mxu1 }
 0x137   : > { %v806_v30 = vpop.f32.mrf.mxu0 }
 0x138   : > { %v837_v9 = vadd.f32 %v806_v30, %v670_v29  ;;  %v1003_v31 = vpop.f32.mrf.mxu1 }
 0x139   : > { %v2762_v32 = vpop.f32.mrf.mxu0 }
 0x13a   : > { %v1034_v33 = vadd.f32 %v1003_v31, %v837_v9  ;;  %v2798_v34 = vpop.f32.mrf.mxu1 }
 0x13b   : > { %v811_v35 = vpop.f32.mrf.mxu0 }
 0x13c   : > { %v838_v37 = vadd.f32 %v811_v35, %v671_v36  ;;  %v1008_v16 = vpop.f32.mrf.mxu1 }
 0x13d   : > { %v2765_v38 = vpop.f32.mrf.mxu0 }
 0x13e   : > { %v1035_v39 = vadd.f32 %v1008_v16, %v838_v37  ;;  %v2801_v40 = vpop.f32.mrf.mxu1 }
 0x13f   : > { %v814_v41 = vpop.f32.mrf.mxu0 }
 0x140   : > { %v839_v42 = vadd.f32 %v814_v41, %v672_v44  ;;  %v1011_v45 = vpop.f32.mrf.mxu1 }
 0x141   : > { %v2766_v22 = vpop.f32.mrf.mxu0 }
 0x142   : > { %v1036_v46 = vadd.f32 %v1011_v45, %v839_v42  ;;  %v2802_v47 = vpop.f32.mrf.mxu1 }
 0x143   : > { %v819_v48 = vpop.f32.mrf.mxu0 }
 0x144   : > { %v840_v50 = vadd.f32 %v819_v48, %v673_v52  ;;  %v1016_v51 = vpop.f32.mrf.mxu1 }
 0x145   : > { %v2769_v29 = vpop.f32.mrf.mxu0 }
 0x146   : > { %v3725_v53 = vadd.f32 %v1016_v51, %v840_v50  ;;  %v2805_v54 = vpop.f32.mrf.mxu1 }
 0x147   : > { %v822_v55 = vpop.f32.mrf.mxu0 }
 0x148   : > { %v841_v56 = vadd.f32 %v822_v55, %v674_v59  ;;  %v1019_v36 = vpop.f32.mrf.mxu1 }
 0x149   : > { %v2770_v57 = vpop.f32.mrf.mxu0 }
 0x14a   : > { %v3727_v58 = vadd.f32 %v1019_v36, %v841_v56  ;;  %v2806_v43 = vpop.f32.mrf.mxu1 }
 0x14b   : > { %v827_v60 = vpop.f32.mrf.mxu0 }
 0x14c   : > { %v842_v44 = vadd.f32 %v827_v60, %v675_v0  ;;  %v1024_v61 = vpop.f32.mrf.mxu1 }
 0x14d   : > { %v2773_v62 = vpop.f32.mrf.mxu0 }
 0x14e   : > { %v3729_v49 = vadd.f32 %v1024_v61, %v842_v44  ;;  %v2809_v63 = vpop.f32.mrf.mxu1 }
 0x14f   : > { %v830_v52 = vpop.f32.mrf.mxu0 }
 0x150   : > { %v843_v3 = vadd.f32 %v830_v52, %v676_v7  ;;  %v1027_v4 = vpop.f32.mrf.mxu1 }
 0x151   : > { %v2774_v5 = vpop.f32.mrf.mxu0 }
 0x152   : > { %v3731_v1 = vadd.f32 %v1027_v4, %v843_v3  ;;  %v2810_v6 = vpop.f32.mrf.mxu1 }
 0x153   : > { %v1234_v59 = vpop.f32.mrf.mxu0 }
 0x154   : > { %v1273_v8 = vadd.f32 %v1234_v59, %v1031_v14  ;;  %v1403_v10 = vpop.f32.mrf.mxu1 }
 0x155   : > { %v2829_v11 = vpop.f32.mrf.mxu0 }
 0x156   : > { %v3733_v12 = vadd.f32 %v1403_v10, %v1273_v8  ;;  %v2865_v13 = vpop.f32.mrf.mxu1 }
 0x157   : > { %v1237_v0 = vpop.f32.mrf.mxu0 }
 0x158   : > { %v1274_v15 = vadd.f32 %v1237_v0, %v1032_v18  ;;  %v1406_v2 = vpop.f32.mrf.mxu1 }
 0x159   : > { %v2830_v17 = vpop.f32.mrf.mxu0 }
 0x15a   : > { %v3735_v19 = vadd.f32 %v1406_v2, %v1274_v15  ;;  %v2866_v20 = vpop.f32.mrf.mxu1 }
 0x15b   : > { %v1242_v7 = vpop.f32.mrf.mxu0 }
 0x15c   : > { %v1275_v21 = vadd.f32 %v1242_v7, %v1033_v27  ;;  %v1411_v23 = vpop.f32.mrf.mxu1 }
 0x15d   : > { %v2833_v24 = vpop.f32.mrf.mxu0 }
 0x15e   : > { %v3737_v25 = vadd.f32 %v1411_v23, %v1275_v21  ;;  %v2869_v26 = vpop.f32.mrf.mxu1 }
 0x15f   : > { %v1245_v14 = vpop.f32.mrf.mxu0 }
 0x160   : > { %v1276_v28 = vadd.f32 %v1245_v14, %v1034_v33  ;;  %v1414_v30 = vpop.f32.mrf.mxu1 }
 0x161   : > { %v2834_v9 = vpop.f32.mrf.mxu0 }
 0x162   : > { %v3739_v31 = vadd.f32 %v1414_v30, %v1276_v28  ;;  %v2870_v32 = vpop.f32.mrf.mxu1 }
 0x163   : > { %v1250_v18 = vpop.f32.mrf.mxu0 }
 0x164   : > { %v1277_v34 = vadd.f32 %v1250_v18, %v1035_v39  ;;  %v1419_v35 = vpop.f32.mrf.mxu1 }
 0x165   : > { %v2837_v37 = vpop.f32.mrf.mxu0 }
 0x166   : > { %v3741_v16 = vadd.f32 %v1419_v35, %v1277_v34  ;;  %v2873_v38 = vpop.f32.mrf.mxu1 }
 0x167   : > { %v1253_v27 = vpop.f32.mrf.mxu0 }
 0x168   : > { %v1278_v40 = vadd.f32 %v1253_v27, %v1036_v46  ;;  %v1422_v41 = vpop.f32.mrf.mxu1 }
 0x169   : > { %v2838_v42 = vpop.f32.mrf.mxu0 }
 0x16a   : > { %v3743_v45 = vadd.f32 %v1422_v41, %v1278_v40  ;;  %v2874_v22 = vpop.f32.mrf.mxu1 }
 0x16b   : > { %v1258_v33 = vpop.f32.mrf.mxu0 }
 0x16c   : > { %v1427_v47 = vpop.f32.mrf.mxu1  ;;  %v1279_v35 = vadd.f32 %v1258_v33, %v3725_v53 }
 0x16d   : > { %v2841_v48 = vpop.f32.mrf.mxu0 }
 0x16e   : > { %v2877_v50 = vpop.f32.mrf.mxu1  ;;  %v1448_v41 = vadd.f32 %v1427_v47, %v1279_v35 }
 0x16f   : > { %v1261_v51 = vpop.f32.mrf.mxu0 }
 0x170   : > { %v1430_v29 = vpop.f32.mrf.mxu1  ;;  %v1280_v42 = vadd.f32 %v1261_v51, %v3727_v58 }
 0x171   : > { %v2842_v54 = vpop.f32.mrf.mxu0 }
 0x172   : > { %v2878_v39 = vpop.f32.mrf.mxu1 }
 0x173   : > { %v1266_v55 = vpop.f32.mrf.mxu0 }
 0x174   : > { %v1435_v56 = vpop.f32.mrf.mxu1 }
 0x175   : > { %v2845_v36 = vpop.f32.mrf.mxu0 }
 0x176   : > { %v2881_v57 = vpop.f32.mrf.mxu1 }
 0x177   : > { %v1269_v43 = vpop.f32.mrf.mxu0  ;;  %v1449_v57 = vadd.f32 %v1430_v29, %v1280_v42 }
 0x178   : > { %v3745_v60 = vpop.f32.mrf.mxu1 }
 0x179   : > { %v2846_v46 = vpop.f32.mrf.mxu0 }
 0x17a   : > { %v2882_v44 = vpop.f32.mrf.mxu1  ;;  %v1281_v46 = vadd.f32 %v1266_v55, %v3729_v49 }
 0x17b   : > { %v1606_v61 = vpop.f32.mrf.mxu0 }
 0x17c   : > { %v1817_v62 = vpop.f32.mrf.mxu1  ;;  %v1645_v48 = vadd.f32 %v1606_v61, %v3733_v12  ;;  %v1450_v51 = vadd.f32 %v1435_v56, %v1281_v46  ;;  %v1282_v12 = vadd.f32 %v1269_v43, %v3731_v1 }
 0x17d   : > { %v2901_v63 = vpop.f32.mrf.mxu0 }
 0x17e   : > { %v2937_v52 = vpop.f32.mrf.mxu1  ;;  %v1856_v63 = vadd.f32 %v1817_v62, %v1645_v48 }
 0x17f   : > { %v1609_v3 = vpop.f32.mrf.mxu0 }
 0x180   : > { %v1820_v4 = vpop.f32.mrf.mxu1  ;;  %v1646_v53 = vadd.f32 %v1609_v3, %v3735_v19 }
 0x181   : > { %v2902_v5 = vpop.f32.mrf.mxu0 }
 0x182   : > { %v2938_v6 = vpop.f32.mrf.mxu1 }
 0x183   : > { %v1614_v59 = vpop.f32.mrf.mxu0 }
 0x184   : > { %v1825_v8 = vpop.f32.mrf.mxu1  ;;  %v1647_v29 = vadd.f32 %v1614_v59, %v3737_v25 }
 0x185   : > { %v2905_v10 = vpop.f32.mrf.mxu0 }
 0x186   : > { %v2941_v11 = vpop.f32.mrf.mxu1  ;;  %v1858_v56 = vadd.f32 %v1825_v8, %v1647_v29 }
 0x187   : > { %v1617_v13 = vpop.f32.mrf.mxu0  ;;  %v1857_v11 = vadd.f32 %v1820_v4, %v1646_v53 }
 0x188   : > { %v3747_v0 = vpop.f32.mrf.mxu1  ;;  %v1648_v1 = vadd.f32 %v1617_v13, %v3739_v31 }
 0x189   : > { %v2906_v15 = vpop.f32.mrf.mxu0 }
 0x18a   : > { %v2942_v2 = vpop.f32.mrf.mxu1 }
 0x18b   : > { %v3749_v17 = vpop.f32.mrf.mxu0  ;;  %v1451_v2 = vadd.f32 %v3745_v60, %v1282_v12 }
 0x18c   : > { %v3751_v20 = vpop.f32.mrf.mxu1  ;;  %v1649_v60 = vadd.f32 %v3749_v17, %v3741_v16 }
 0x18d   : > { %v2909_v7 = vpop.f32.mrf.mxu0 }
 0x18e   : > { %v2945_v21 = vpop.f32.mrf.mxu1 }
 0x18f   : > { %v3753_v23 = vpop.f32.mrf.mxu0 }
 0x190   : > { %v3755_v24 = vpop.f32.mrf.mxu1 }
 0x191   : > { %v2910_v26 = vpop.f32.mrf.mxu0 }
 0x192   : > { %v2946_v14 = vpop.f32.mrf.mxu1 }
 0x193   : > { %v1630_v28 = vpop.f32.mrf.mxu0 }
 0x194   : > { %v1841_v30 = vpop.f32.mrf.mxu1  ;;  %v1651_v54 = vadd.f32 %v1630_v28, %v1448_v41 }
 0x195   : > { %v2913_v9 = vpop.f32.mrf.mxu0 }
 0x196   : > { %v2949_v32 = vpop.f32.mrf.mxu1  ;;  %v1862_v52 = vadd.f32 %v1841_v30, %v1651_v54  ;;  %v1859_v9 = vadd.f32 %v3747_v0, %v1648_v1 }
 0x197   : > { %v1633_v18 = vpop.f32.mrf.mxu0 }
 0x198   : > { %v1844_v34 = vpop.f32.mrf.mxu1  ;;  %v1652_v5 = vadd.f32 %v1633_v18, %v1449_v57 }
 0x199   : > { %v2914_v37 = vpop.f32.mrf.mxu0 }
 0x19a   : > { %v2950_v38 = vpop.f32.mrf.mxu1  ;;  %v1863_v55 = vadd.f32 %v1844_v34, %v1652_v5  ;;  %v1860_v37 = vadd.f32 %v3751_v20, %v1649_v60 }
 0x19b   : > { %v1638_v27 = vpop.f32.mrf.mxu0  ;;  %v1650_v38 = vadd.f32 %v3753_v23, %v3743_v45 }
 0x19c   : > { %v1849_v40 = vpop.f32.mrf.mxu1  ;;  %v1653_v62 = vadd.f32 %v1638_v27, %v1450_v51 }
 0x19d   : > { %v2917_v22 = vpop.f32.mrf.mxu0  ;;  %v1861_v17 = vadd.f32 %v3755_v24, %v1650_v38 }
 0x19e   : > { %v2953_v50 = vpop.f32.mrf.mxu1  ;;  %v1864_v4 = vadd.f32 %v1849_v40, %v1653_v62 }
 0x19f   : > { %v1641_v39 = vpop.f32.mrf.mxu0 }
 0x1a0   : > { %v1852_v36 = vpop.f32.mrf.mxu1  ;;  %v1654_v26 = vadd.f32 %v1641_v39, %v1451_v2 }
 0x1a1   : > { %v2918_v44 = vpop.f32.mrf.mxu0 }
 0x1a2   : > { %v2954_v33 = vpop.f32.mrf.mxu1  ;;  %v1865_v8 = vadd.f32 %v1852_v36, %v1654_v26 }
 0x1a3   : > { %v1986_v47 = vpop.f32.mrf.mxu0 }
 0x1a4   : > { %v2025_v6 = vadd.f32 %v1986_v47, %v1856_v63  ;;  %v2010_v58 = vpop.f32.mrf.mxu1 }
 0x1a5   : > { %v2031_v61 = vadd.f32 %v2010_v58, %v1862_v52  ;;  %v2973_v10 = vpop.f32.mrf.mxu0 }
 0x1a6   : > { %2035 = vst [vmem:[#allocation2 + $0x30] sm:$0xff] %v2025_v6  ;;  %v2985_v49 = vpop.f32.mrf.mxu1 }
 0x1a7   : > { %2041 = vst [vmem:[#allocation2 + $0x8] sm:$0xff] %v2031_v61  ;;  %v1989_v19 = vpop.f32.mrf.mxu0 }
 0x1a8   : > { %v2026_v3 = vadd.f32 %v1989_v19, %v1857_v11  ;;  %v2013_v15 = vpop.f32.mrf.mxu1 }
 0x1a9   : > { %v2032_v7 = vadd.f32 %v2013_v15, %v1863_v55  ;;  %v2974_v21 = vpop.f32.mrf.mxu0 }
 0x1aa   : > { %2036 = vst [vmem:[#allocation2] sm:$0xff] %v2026_v3  ;;  %v2986_v43 = vpop.f32.mrf.mxu1 }
 0x1ab   : > { %2042 = vst [vmem:[#allocation2 + $0x20] sm:$0xff] %v2032_v7  ;;  %v1994_v25 = vpop.f32.mrf.mxu0 }
 0x1ac   : > { %v2027_v59 = vadd.f32 %v1994_v25, %v1858_v56  ;;  %v2018_v14 = vpop.f32.mrf.mxu1 }
 0x1ad   : > { %v2033_v28 = vadd.f32 %v2018_v14, %v1864_v4  ;;  %v2977_v30 = vpop.f32.mrf.mxu0 }
 0x1ae   : > { %2037 = vst [vmem:[#allocation2 + $0x18] sm:$0xff] %v2027_v59  ;;  %v2989_v32 = vpop.f32.mrf.mxu1 }
 0x1af   : > { %2043 = vst [vmem:[#allocation2 + $0x40] sm:$0xff] %v2033_v28  ;;  %v1997_v31 = vpop.f32.mrf.mxu0 }
 0x1b0   : > { %v2028_v13 = vadd.f32 %v1997_v31, %v1859_v9  ;;  %v2021_v18 = vpop.f32.mrf.mxu1 }
 0x1b1   : > { %v2034_v34 = vadd.f32 %v2021_v18, %v1865_v8  ;;  %v2978_v35 = vpop.f32.mrf.mxu0 }
 0x1b2   : > { %2038 = vst [vmem:[#allocation2 + $0x10] sm:$0xff] %v2028_v13  ;;  %v2990_v27 = vpop.f32.mrf.mxu1 }
 0x1b3   : > { %2044 = vst [vmem:[#allocation2 + $0x38] sm:$0x3f] %v2034_v34  ;;  %v2002_v0 = vpop.f32.mrf.mxu0 }
 0x1b4   : > { %v2029_v40 = vadd.f32 %v2002_v0, %v1860_v37 }
 0x1b5   : > { %v2981_v16 = vpop.f32.mrf.mxu0 }
 0x1b6   : > { %2039 = vst [vmem:[#allocation2 + $0x48] sm:$0xff] %v2029_v40  ;;  %2048 = sbr.rel (%p2502_p11) target bundleno = 459 (0x1cb), region = 44 }
 0x1b7   : > { %v2005_v41 = vpop.f32.mrf.mxu0 }
 0x1b8   : > { %v2030_v42 = vadd.f32 %v2005_v41, %v1861_v17 }
 0x1b9   : > { %v2982_v22 = vpop.f32.mrf.mxu0 }
 0x1ba   : > { %2040 = vst [vmem:[#allocation2 + $0x28] sm:$0xff] %v2030_v42 }
 0x1bb   : > { %v2049_v20 = vld [vmem:[#allocation2 + $0x30] sm:$0xff]  ;;  %v2050_v48 = vld [vmem:[#allocation2] sm:$0xff]  ;;  %v2051_v54 = vld [vmem:[#allocation2 + $0x18] sm:$0xff] }
 0x1bc   : > { %v2503_v45 = vld [vmem:[%s3809_s2] ss:$0 sm:$0xff]  ;;  %v2052_v39 = vld [vmem:[#allocation2 + $0x10] sm:$0xff]  ;;  %v2055_v63 = vld [vmem:[#allocation2 + $0x8] sm:$0xff] }
 0x1bd   : > { %v2066_v23 = vmul.f32 %v2503_v45, %v2049_v20  ;;  %v2067_v50 = vmul.f32 %v2503_v45, %v2050_v48  ;;  %v2504_v24 = vld [vmem:[%s3810_s3] ss:$0 sm:$0xff]  ;;  %v2068_v36 = vmul.f32 %v2503_v45, %v2051_v54  ;;  %v2069_v57 = vmul.f32 %v2503_v45, %v2052_v39  ;;  %v2053_v46 = vld [vmem:[#allocation2 + $0x48] sm:$0xff]  ;;  %v2058_v55 = vld [vmem:[#allocation2 + $0x38] sm:$0x3f] }
 0x1be   : > { %v2070_v52 = vmul.f32 %v2503_v45, %v2053_v46  ;;  %v2056_v47 = vld [vmem:[#allocation2 + $0x20] sm:$0xff]  ;;  %v2072_v51 = vmul.f32 %v2503_v45, %v2055_v63  ;;  %v2075_v26 = vmul.f32 %v2503_v45, %v2058_v55 }
 0x1bf   : > { %v2083_v53 = vadd.f32 %v2504_v24, %v2066_v23  ;;  %v2084_v33 = vadd.f32 %v2504_v24, %v2067_v50  ;;  %v2085_v6 = vadd.f32 %v2504_v24, %v2068_v36  ;;  %v2086_v58 = vadd.f32 %v2504_v24, %v2069_v57  ;;  %v2057_v61 = vld [vmem:[#allocation2 + $0x40] sm:$0xff] }
 0x1c0   : > { %v2073_v12 = vmul.f32 %v2503_v45, %v2056_v47  ;;  %v2087_v29 = vadd.f32 %v2504_v24, %v2070_v52  ;;  %v2089_v3 = vadd.f32 %v2504_v24, %v2072_v51  ;;  %v2074_v56 = vmul.f32 %v2503_v45, %v2057_v61 }
 0x1c1   : > { %v2054_v44 = vld [vmem:[#allocation2 + $0x28] sm:$0xff]  ;;  %v2093_v10 = vmax.f32 %v2083_v53, 0.0  ;;  %v2094_v11 = vmax.f32 %v2084_v33, 0.0  ;;  %v2095_v62 = vmax.f32 %v2085_v6, 0.0  ;;  %v2096_v19 = vmax.f32 %v2086_v58, 0.0 }
 0x1c2   : > { %v2071_v5 = vmul.f32 %v2503_v45, %v2054_v44  ;;  %v2090_v15 = vadd.f32 %v2504_v24, %v2073_v12  ;;  %v2097_v7 = vmax.f32 %v2087_v29, 0.0  ;;  %v2099_v43 = vmax.f32 %v2089_v3, 0.0 }
 0x1c3   : > { %v2530_v2 = vpack.c.bf16 %v2094_v11, %v2093_v10  ;;  %v2535_v1 = vpack.c.bf16 %v2096_v19, %v2095_v62  ;;  %v2091_v59 = vadd.f32 %v2504_v24, %v2074_v56  ;;  %v2092_v28 = vadd.f32 %v2504_v24, %v2075_v26 }
 0x1c4   : > { %v2088_v49 = vadd.f32 %v2504_v24, %v2071_v5  ;;  %v2100_v4 = vmax.f32 %v2090_v15, 0.0 }
 0x1c5   : > { %2531 = vst [vmem:[%s3319_s27] sm:$0xff] %v2530_v2   ;;  %2547 = vst [vmem:[%s3319_s27 + $0x8] sm:$0xff] %v2535_v1   ;;  %v2101_v30 = vmax.f32 %v2091_v59, 0.0  ;;  %v2102_v9 = vmax.f32 %v2092_v28, 0.0 }
 0x1c6   : > { %v2098_v21 = vmax.f32 %v2088_v49, 0.0  ;;  %v2545_v14 = vpack.c.bf16 %v2100_v4, %v2099_v43 }
 0x1c7   : > { %v2525_v60 = vpack.c.bf16 %v2101_v30, %v2101_v30  ;;  %v2526_v32 = vpack.c.bf16 %v2102_v9, %v2102_v9 }
 0x1c8   : > { %v2540_v25 = vpack.c.bf16 %v2098_v21, %v2097_v7  ;;  %2549 = vst [vmem:[%s3319_s27 + $0x18] sm:$0xff] %v2545_v14  }
 0x1c9   : > { %2151 = vst [vmem:[%s3319_s27 + $0x20] sm:$0xf] %v2525_v60  ;;  %2152 = vst [vmem:[%s3319_s27 + $0x24] sm:$0x7] %v2526_v32 }
 0x1ca   : > { %2548 = vst [vmem:[%s3319_s27 + $0x10] sm:$0xff] %v2540_v25  }
 0x1cb PF: > { %s14_s21 = sadd.s32 1, %s3224_s21   ;;  %s3813_s29 = sld [smem:[#allocation3_spill]] }
 0x1cc   : > { %p11_p12 = scmp.ge.s32.totalorder %s14_s21, 26   ;;  %s3814_s15 = smov %s3212_s18 }
 0x1cd   : > { %s3815_s16 = smov %s3216_s19  ;;  %s3816_s17 = smov %s3220_s20 }
 0x1ce   : > { %s3817_s18 = smov %s3821_s22  ;;  %s3818_s19 = smov %s3825_s23 }
 0x1cf   :  { %13 = sbr.rel (!%p11_p12) target bundleno = 4 (0x4), region = 85 }
 0x1d1   : > { %s3819_s20 = smov %s3813_s29 }

</bundles_post_ra>
